<compile_context>
chip_gen: v7x
topology: tpu7x:2x2x1
jax: 0.10.0
libtpu: 0.0.40
codegen_flags: <defaults>
</compile_context>

<pallas_src>
import jax
import jax.numpy as jnp
from jax.experimental import pallas as pl
from jax.experimental.pallas import tpu as pltpu


# ----------------------------------------------------------------------------
# Chip-generation helpers (tiling / tanh-precision policy)
# ----------------------------------------------------------------------------
def _device_kind():
    try:
        return jax.devices()[0].device_kind.lower()
    except Exception:
        return ""


def _num_tensorcores_per_chip(kind):
    # v7x has 2 TensorCores per chip; v5e/v6e have 1.
    return 2 if "v7" in kind else 1


def _tanh_in_bf16(kind):
    # v6e/v7x EUP supports packed bf16 tanh; v5e (and older) keep f32 tanh.
    return ("v6" in kind) or ("v7" in kind)


def _pick_tile_b(B, num_cores=1, max_tile=2048):
    """Batch tile: fewest grid steps on single-TC chips, >=2 parallel steps on v7x.

    Tiles are multiples of 16 (bf16 sublane pack), falling back to multiples of 8,
    and finally to the full batch extent (always a legal BlockSpec block)."""
    if num_cores <= 1 and B <= max_tile:
        return B                                  # one grid step, full-extent block
    upper = min(max_tile, max(16, B // max(num_cores, 1)))
    upper = min(upper, B)
    for t in range(upper, 15, -1):                # prefer multiples of 16
        if B % t == 0 and t % 16 == 0:
            return t
    for t in range(upper, 7, -1):                 # then multiples of 8
        if B % t == 0 and t % 8 == 0:
            return t
    return B                                      # full extent: always lowers


# ----------------------------------------------------------------------------
# Kernel body (built once per (n_mid_layers, tanh precision) configuration)
# ----------------------------------------------------------------------------
def _make_sf_decoder_kernel(n_mid_layers, tanh_in_bf16):
    def act(acc_f32):
        if tanh_in_bf16:
            return jnp.tanh(acc_f32.astype(jnp.bfloat16))      # bf16 EUP path
        return jnp.tanh(acc_f32).astype(jnp.bfloat16)          # f32 tanh (v5e)

    def kernel(x_ref, w_in_ref, w_mid_ref, w_out_ref, b_mid_ref, b_out_ref, o_ref):
        # x_ref is already bf16: (tile_b, latent)
        h = x_ref[...]

        # layer 1: latent -> mid
        acc = jnp.dot(h, w_in_ref[...], preferred_element_type=jnp.float32)
        acc = acc + b_mid_ref[0:1, :]
        h = act(acc)

        # layers 2..5: mid -> mid (static unroll, weights read from stacked array)
        for i in range(n_mid_layers):
            acc = jnp.dot(h, w_mid_ref[i], preferred_element_type=jnp.float32)
            acc = acc + b_mid_ref[i + 1:i + 2, :]
            h = act(acc)

        # layer 6: mid -> in_size (no activation)
        out = jnp.dot(h, w_out_ref[...], preferred_element_type=jnp.float32)
        out = out + b_out_ref[...]
        o_ref[...] = out.astype(o_ref.dtype)

    return kernel


# ----------------------------------------------------------------------------
# One-time parameter preparation (do NOT redo per forward call)
# ----------------------------------------------------------------------------
def prepare_sf_decoder_params(params):
    """params: list of 6 (W, b), W (in_features, out_features), b (out_features,)/(1,out).

    Returns pre-cast / pre-stacked arrays consumed directly by the kernel."""
    ws = [jnp.asarray(W) for W, _ in params]
    bs = [jnp.asarray(b).reshape(1, -1).astype(jnp.float32) for _, b in params]
    return {
        "w_in": ws[0].astype(jnp.bfloat16),                      # (latent, mid)
        "w_mid": jnp.stack(ws[1:-1], axis=0).astype(jnp.bfloat16),  # (4, mid, mid)
        "w_out": ws[-1].astype(jnp.bfloat16),                    # (mid, in_size)
        "b_mid": jnp.concatenate(bs[:-1], axis=0),               # (5, mid) f32
        "b_out": bs[-1],                                         # (1, in_size) f32
    }


# ----------------------------------------------------------------------------
# Forward wrapper
# ----------------------------------------------------------------------------
def sf_decoder_forward(x, prepared, *, tile_b=None, out_dtype=None):
    """x: (B, latent). prepared: output of prepare_sf_decoder_params."""
    B, latent = x.shape
    mid = prepared["w_in"].shape[1]
    out_size = prepared["w_out"].shape[1]
    n_mid = prepared["w_mid"].shape[0]
    if out_dtype is None:
        out_dtype = x.dtype
    out_itemsize = jnp.dtype(out_dtype).itemsize

    kind = _device_kind()
    if tile_b is None:
        tile_b = _pick_tile_b(B, num_cores=_num_tensorcores_per_chip(kind))
    assert B % tile_b == 0, "batch must be divisible by tile_b"
    grid = (B // tile_b,)

    # Single cheap cast: halves x DMA and removes the in-kernel VPU cast pass.
    x_bf16 = x.astype(jnp.bfloat16)

    kernel = _make_sf_decoder_kernel(n_mid, _tanh_in_bf16(kind))

    in_specs = [
        pl.BlockSpec((tile_b, latent), lambda i: (i, 0)),                 # x, batch-tiled
        pl.BlockSpec(prepared["w_in"].shape, lambda i: (0, 0)),           # replicated
        pl.BlockSpec(prepared["w_mid"].shape, lambda i: (0, 0, 0)),       # replicated
        pl.BlockSpec(prepared["w_out"].shape, lambda i: (0, 0)),          # replicated
        pl.BlockSpec(prepared["b_mid"].shape, lambda i: (0, 0)),          # replicated
        pl.BlockSpec(prepared["b_out"].shape, lambda i: (0, 0)),          # replicated
    ]
    out_spec = pl.BlockSpec((tile_b, out_size), lambda i: (i, 0))

    # Advisory cost estimate for XLA scheduling around this small call.
    flops = 2 * B * (latent * mid + n_mid * mid * mid + mid * out_size)
    transcendentals = B * mid * (n_mid + 1)
    weight_bytes = ((prepared["w_in"].size + prepared["w_mid"].size
                     + prepared["w_out"].size) * 2
                    + (prepared["b_mid"].size + prepared["b_out"].size) * 4)
    bytes_accessed = x_bf16.size * 2 + weight_bytes + B * out_size * out_itemsize

    # Rough VMEM footprint; only override the scoped limit if it might matter
    # (forward-proofing for v7x's 64 MiB physical / 32 MiB scoped default).
    vmem_est = (2 * tile_b * latent * 2            # double-buffered bf16 x
                + 2 * tile_b * out_size * out_itemsize
                + weight_bytes
                + 6 * tile_b * mid * 4)            # live f32/bf16 intermediates (generous)
    compiler_kwargs = dict(dimension_semantics=("parallel",))
    if vmem_est > 30 * 1024 * 1024:
        compiler_kwargs["vmem_limit_bytes"] = min(100 * 1024 * 1024,
                                                  int(vmem_est * 1.25))

    return pl.pallas_call(
        kernel,
        out_shape=jax.ShapeDtypeStruct((B, out_size), out_dtype),
        grid=grid,
        in_specs=in_specs,
        out_specs=out_spec,
        compiler_params=pltpu.CompilerParams(**compiler_kwargs),
        cost_estimate=pl.CostEstimate(
            flops=flops,
            transcendentals=transcendentals,
            bytes_accessed=bytes_accessed),
    )(x_bf16, prepared["w_in"], prepared["w_mid"], prepared["w_out"],
      prepared["b_mid"], prepared["b_out"])


# ----------------------------------------------------------------------------
# Init + references
# ----------------------------------------------------------------------------
def init_linear(key, fan_in, fan_out, dtype=jnp.float32):
    """PyTorch nn.Linear default init: U(-1/sqrt(fan_in), 1/sqrt(fan_in))."""
    kw, kb = jax.random.split(key)
    bound = 1.0 / float(fan_in) ** 0.5
    W = jax.random.uniform(kw, (fan_in, fan_out), dtype, -bound, bound)
    b = jax.random.uniform(kb, (1, fan_out), dtype, -bound, bound)
    return W, b


def sf_decoder_reference_f32(x, params):
    """Exact f32 semantics of the PyTorch module."""
    h = x.astype(jnp.float32)
    n = len(params)
    for idx, (W, b) in enumerate(params):
        h = h @ W.astype(jnp.float32) + b.astype(jnp.float32)
        if idx < n - 1:
            h = jnp.tanh(h)
    return h


def sf_decoder_reference_kernel_arith(x, prepared, tanh_in_bf16, out_dtype):
    """Pure-JAX reference that mimics the kernel's bf16/f32 arithmetic exactly."""
    def act(acc):
        if tanh_in_bf16:
            return jnp.tanh(acc.astype(jnp.bfloat16))
        return jnp.tanh(acc).astype(jnp.bfloat16)

    h = x.astype(jnp.bfloat16)
    acc = jnp.dot(h, prepared["w_in"], preferred_element_type=jnp.float32)
    h = act(acc + prepared["b_mid"][0:1, :])
    for i in range(prepared["w_mid"].shape[0]):
        acc = jnp.dot(h, prepared["w_mid"][i], preferred_element_type=jnp.float32)
        h = act(acc + prepared["b_mid"][i + 1:i + 2, :])
    out = jnp.dot(h, prepared["w_out"], preferred_element_type=jnp.float32)
    out = out + prepared["b_out"]
    return out.astype(out_dtype)


# ----------------------------------------------------------------------------
# Demo / self-test
# ----------------------------------------------------------------------------
if __name__ == "__main__":
    # Scaled-down sizes consistent with the module structure.
    batch = 256
    latent_size = 64
    mid_size = 128
    in_size = 256

    key = jax.random.PRNGKey(0)
    keys = jax.random.split(key, 7)

    x = jax.random.normal(keys[0], (batch, latent_size), dtype=jnp.float32)

    dims = ([(latent_size, mid_size)]
            + [(mid_size, mid_size)] * 4
            + [(mid_size, in_size)])
    raw_params = [init_linear(keys[i + 1], fin, fout)
                  for i, (fin, fout) in enumerate(dims)]

    # ONE-TIME parameter preparation (bf16 weights, stacked mids, f32 biases).
    prepared = prepare_sf_decoder_params(raw_params)

    # bf16 output: halves the dominant HBM write on this latency/HBM-bound kernel.
    out = sf_decoder_forward(x, prepared, out_dtype=jnp.bfloat16)
    out = jax.block_until_ready(out)
    assert out.shape == (batch, in_size)

    kind = _device_kind()

    # Tight check vs a reference with identical bf16/f32 arithmetic...
    ref_k = sf_decoder_reference_kernel_arith(
        x, prepared, tanh_in_bf16=_tanh_in_bf16(kind), out_dtype=jnp.bfloat16)
    assert jnp.allclose(out.astype(jnp.float32), ref_k.astype(jnp.float32),
                        atol=2e-2, rtol=2e-2), "mismatch vs kernel-arithmetic reference"

    # ...and a loose check vs the pure-f32 PyTorch semantics (bf16 precision contract).
    ref_f32 = sf_decoder_reference_f32(x, raw_params)
    assert jnp.allclose(out.astype(jnp.float32), ref_f32,
                        atol=1e-1, rtol=1e-1), "mismatch vs f32 reference"

    print("KERNEL_OK")
</pallas_src>

<mosaic_0001>
module attributes {stable_mosaic.version = 11 : i64} {
  func.func @kernel(%arg0: i32, %arg1: memref<256x64xbf16, #tpu.memory_space<vmem>>, %arg2: memref<64x128xbf16, #tpu.memory_space<vmem>>, %arg3: memref<4x128x128xbf16, #tpu.memory_space<vmem>>, %arg4: memref<128x256xbf16, #tpu.memory_space<vmem>>, %arg5: memref<5x128xf32, #tpu.memory_space<vmem>>, %arg6: memref<1x256xf32, #tpu.memory_space<vmem>>, %arg7: memref<256x256xbf16, #tpu.memory_space<vmem>>) attributes {dimension_semantics = [#tpu.dimension_semantics<parallel>], iteration_bounds = array<i64: 1>, scalar_prefetch = 0 : i64, scratch_operands = 0 : i64, tpu.core_type = #tpu.core_type<tc>, window_params = [{transform_indices = @transform_0, window_bounds = array<i64: 256, 64>}, {pipeline_mode = #tpu.pipeline_mode<synchronous>, transform_indices = @transform_1, window_bounds = array<i64: 64, 128>}, {pipeline_mode = #tpu.pipeline_mode<synchronous>, transform_indices = @transform_2, window_bounds = array<i64: 4, 128, 128>}, {pipeline_mode = #tpu.pipeline_mode<synchronous>, transform_indices = @transform_3, window_bounds = array<i64: 128, 256>}, {pipeline_mode = #tpu.pipeline_mode<synchronous>, transform_indices = @transform_4, window_bounds = array<i64: 5, 128>}, {pipeline_mode = #tpu.pipeline_mode<synchronous>, transform_indices = @transform_5, window_bounds = array<i64: 1, 256>}, {transform_indices = @transform_6, window_bounds = array<i64: 256, 256>}]} {
    %c0 = arith.constant 0 : index
    %c0_0 = arith.constant 0 : index
    %0 = vector.load %arg1[%c0, %c0_0] : memref<256x64xbf16, #tpu.memory_space<vmem>>, vector<256x64xbf16>
    %c0_1 = arith.constant 0 : index
    %c0_2 = arith.constant 0 : index
    %1 = vector.load %arg2[%c0_1, %c0_2] : memref<64x128xbf16, #tpu.memory_space<vmem>>, vector<64x128xbf16>
    %cst = arith.constant dense<0.000000e+00> : vector<256x128xf32>
    %2 = tpu.matmul %0, %1, %cst {dimension_numbers = #tpu.dot_dimension_numbers<[1], [0], [0], [1], [0, 0, 1, 1], [], []>} : vector<256x64xbf16>, vector<64x128xbf16>, vector<256x128xf32> -> vector<256x128xf32>
    %c0_3 = arith.constant 0 : index
    %c0_4 = arith.constant 0 : index
    %3 = vector.load %arg5[%c0_3, %c0_4] : memref<5x128xf32, #tpu.memory_space<vmem>>, vector<1x128xf32>
    %4 = vector.broadcast %3 : vector<1x128xf32> to vector<256x128xf32>
    %5 = arith.addf %2, %4 : vector<256x128xf32>
    %6 = math.tanh %5 : vector<256x128xf32>
    %7 = arith.truncf %6 : vector<256x128xf32> to vector<256x128xbf16>
    %c0_5 = arith.constant 0 : index
    %c0_6 = arith.constant 0 : index
    %c0_7 = arith.constant 0 : index
    %8 = vector.load %arg3[%c0_5, %c0_6, %c0_7] : memref<4x128x128xbf16, #tpu.memory_space<vmem>>, vector<1x128x128xbf16>
    %9 = vector.shape_cast %8 : vector<1x128x128xbf16> to vector<128x128xbf16>
    %cst_8 = arith.constant dense<0.000000e+00> : vector<256x128xf32>
    %10 = tpu.matmul %7, %9, %cst_8 {dimension_numbers = #tpu.dot_dimension_numbers<[1], [0], [0], [1], [0, 0, 1, 1], [], []>} : vector<256x128xbf16>, vector<128x128xbf16>, vector<256x128xf32> -> vector<256x128xf32>
    %c1 = arith.constant 1 : index
    %c0_9 = arith.constant 0 : index
    %11 = vector.load %arg5[%c1, %c0_9] : memref<5x128xf32, #tpu.memory_space<vmem>>, vector<1x128xf32>
    %12 = vector.broadcast %11 : vector<1x128xf32> to vector<256x128xf32>
    %13 = arith.addf %10, %12 : vector<256x128xf32>
    %14 = math.tanh %13 : vector<256x128xf32>
    %15 = arith.truncf %14 : vector<256x128xf32> to vector<256x128xbf16>
    %c1_10 = arith.constant 1 : index
    %c0_11 = arith.constant 0 : index
    %c0_12 = arith.constant 0 : index
    %16 = vector.load %arg3[%c1_10, %c0_11, %c0_12] : memref<4x128x128xbf16, #tpu.memory_space<vmem>>, vector<1x128x128xbf16>
    %17 = vector.shape_cast %16 : vector<1x128x128xbf16> to vector<128x128xbf16>
    %cst_13 = arith.constant dense<0.000000e+00> : vector<256x128xf32>
    %18 = tpu.matmul %15, %17, %cst_13 {dimension_numbers = #tpu.dot_dimension_numbers<[1], [0], [0], [1], [0, 0, 1, 1], [], []>} : vector<256x128xbf16>, vector<128x128xbf16>, vector<256x128xf32> -> vector<256x128xf32>
    %c2 = arith.constant 2 : index
    %c0_14 = arith.constant 0 : index
    %19 = vector.load %arg5[%c2, %c0_14] : memref<5x128xf32, #tpu.memory_space<vmem>>, vector<1x128xf32>
    %20 = vector.broadcast %19 : vector<1x128xf32> to vector<256x128xf32>
    %21 = arith.addf %18, %20 : vector<256x128xf32>
    %22 = math.tanh %21 : vector<256x128xf32>
    %23 = arith.truncf %22 : vector<256x128xf32> to vector<256x128xbf16>
    %c2_15 = arith.constant 2 : index
    %c0_16 = arith.constant 0 : index
    %c0_17 = arith.constant 0 : index
    %24 = vector.load %arg3[%c2_15, %c0_16, %c0_17] : memref<4x128x128xbf16, #tpu.memory_space<vmem>>, vector<1x128x128xbf16>
    %25 = vector.shape_cast %24 : vector<1x128x128xbf16> to vector<128x128xbf16>
    %cst_18 = arith.constant dense<0.000000e+00> : vector<256x128xf32>
    %26 = tpu.matmul %23, %25, %cst_18 {dimension_numbers = #tpu.dot_dimension_numbers<[1], [0], [0], [1], [0, 0, 1, 1], [], []>} : vector<256x128xbf16>, vector<128x128xbf16>, vector<256x128xf32> -> vector<256x128xf32>
    %c3 = arith.constant 3 : index
    %c0_19 = arith.constant 0 : index
    %27 = vector.load %arg5[%c3, %c0_19] : memref<5x128xf32, #tpu.memory_space<vmem>>, vector<1x128xf32>
    %28 = vector.broadcast %27 : vector<1x128xf32> to vector<256x128xf32>
    %29 = arith.addf %26, %28 : vector<256x128xf32>
    %30 = math.tanh %29 : vector<256x128xf32>
    %31 = arith.truncf %30 : vector<256x128xf32> to vector<256x128xbf16>
    %c3_20 = arith.constant 3 : index
    %c0_21 = arith.constant 0 : index
    %c0_22 = arith.constant 0 : index
    %32 = vector.load %arg3[%c3_20, %c0_21, %c0_22] : memref<4x128x128xbf16, #tpu.memory_space<vmem>>, vector<1x128x128xbf16>
    %33 = vector.shape_cast %32 : vector<1x128x128xbf16> to vector<128x128xbf16>
    %cst_23 = arith.constant dense<0.000000e+00> : vector<256x128xf32>
    %34 = tpu.matmul %31, %33, %cst_23 {dimension_numbers = #tpu.dot_dimension_numbers<[1], [0], [0], [1], [0, 0, 1, 1], [], []>} : vector<256x128xbf16>, vector<128x128xbf16>, vector<256x128xf32> -> vector<256x128xf32>
    %c4 = arith.constant 4 : index
    %c0_24 = arith.constant 0 : index
    %35 = vector.load %arg5[%c4, %c0_24] : memref<5x128xf32, #tpu.memory_space<vmem>>, vector<1x128xf32>
    %36 = vector.broadcast %35 : vector<1x128xf32> to vector<256x128xf32>
    %37 = arith.addf %34, %36 : vector<256x128xf32>
    %38 = math.tanh %37 : vector<256x128xf32>
    %39 = arith.truncf %38 : vector<256x128xf32> to vector<256x128xbf16>
    %c0_25 = arith.constant 0 : index
    %c0_26 = arith.constant 0 : index
    %40 = vector.load %arg4[%c0_25, %c0_26] : memref<128x256xbf16, #tpu.memory_space<vmem>>, vector<128x256xbf16>
    %cst_27 = arith.constant dense<0.000000e+00> : vector<256x256xf32>
    %41 = tpu.matmul %39, %40, %cst_27 {dimension_numbers = #tpu.dot_dimension_numbers<[1], [0], [0], [1], [0, 0, 1, 1], [], []>} : vector<256x128xbf16>, vector<128x256xbf16>, vector<256x256xf32> -> vector<256x256xf32>
    %c0_28 = arith.constant 0 : index
    %c0_29 = arith.constant 0 : index
    %42 = vector.load %arg6[%c0_28, %c0_29] : memref<1x256xf32, #tpu.memory_space<vmem>>, vector<1x256xf32>
    %43 = vector.broadcast %42 : vector<1x256xf32> to vector<256x256xf32>
    %44 = arith.addf %41, %43 : vector<256x256xf32>
    %45 = arith.truncf %44 : vector<256x256xf32> to vector<256x256xbf16>
    %c0_30 = arith.constant 0 : index
    %c0_31 = arith.constant 0 : index
    %46 = vector.load %arg7[%c0_30, %c0_31] : memref<256x256xbf16, #tpu.memory_space<vmem>>, vector<256x256xbf16>
    tpu.vector_store %arg7[%c0_30, %c0_31], %45 {strides = array<i32>} : memref<256x256xbf16, #tpu.memory_space<vmem>>, vector<256x256xbf16>,
    return
  }
  func.func @transform_0(%arg0: i32) -> (i32, i32) {
    %c0_i32 = arith.constant 0 : i32
    %c0_i32_0 = arith.constant 0 : i32
    return %arg0, %c0_i32 : i32, i32
  }
  func.func @transform_1(%arg0: i32) -> (i32, i32) {
    %c0_i32 = arith.constant 0 : i32
    %c0_i32_0 = arith.constant 0 : i32
    %c0_i32_1 = arith.constant 0 : i32
    return %c0_i32, %c0_i32_0 : i32, i32
  }
  func.func @transform_2(%arg0: i32) -> (i32, i32, i32) {
    %c0_i32 = arith.constant 0 : i32
    %c0_i32_0 = arith.constant 0 : i32
    %c0_i32_1 = arith.constant 0 : i32
    %c0_i32_2 = arith.constant 0 : i32
    return %c0_i32, %c0_i32_0, %c0_i32_1 : i32, i32, i32
  }
  func.func @transform_3(%arg0: i32) -> (i32, i32) {
    %c0_i32 = arith.constant 0 : i32
    %c0_i32_0 = arith.constant 0 : i32
    %c0_i32_1 = arith.constant 0 : i32
    return %c0_i32, %c0_i32_0 : i32, i32
  }
  func.func @transform_4(%arg0: i32) -> (i32, i32) {
    %c0_i32 = arith.constant 0 : i32
    %c0_i32_0 = arith.constant 0 : i32
    %c0_i32_1 = arith.constant 0 : i32
    return %c0_i32, %c0_i32_0 : i32, i32
  }
  func.func @transform_5(%arg0: i32) -> (i32, i32) {
    %c0_i32 = arith.constant 0 : i32
    %c0_i32_0 = arith.constant 0 : i32
    %c0_i32_1 = arith.constant 0 : i32
    return %c0_i32, %c0_i32_0 : i32, i32
  }
  func.func @transform_6(%arg0: i32) -> (i32, i32) {
    %c0_i32 = arith.constant 0 : i32
    %c0_i32_0 = arith.constant 0 : i32
    return %arg0, %c0_i32 : i32, i32
  }
}

</mosaic_0001>

<bundles_post_ra>
// kernel: tpu_custom_call.1
= control target key start
LH: loop header
LB: loop body
LE: loop exit
PB: predicated region body
PF: predicated region fallthrough
CT: control target
= control target key end

     0   :  { %11 = vsyncpa [#allocation3], 0  ;;  %s3553_s0 = inlined_call_operand.vmem [shape: bf16[256,64], index: 0, kind: input, shape index: {}]   ;;  %s3554_s1 = inlined_call_operand.vmem [shape: bf16[64,128], index: 1, kind: input, shape index: {}]   ;;  %s3555_s2 = inlined_call_operand.hbm [shape: bf16[4,128,128], index: 2, kind: input, shape index: {}]   ;;  %s3556_s3 = inlined_call_operand.vmem [shape: bf16[128,256], index: 3, kind: input, shape index: {}]   ;;  %s3557_s4 = inlined_call_operand.vmem [shape: f32[5,128], index: 4, kind: input, shape index: {}]   ;;  %s3558_s5 = inlined_call_operand.vmem [shape: f32[1,256], index: 5, kind: input, shape index: {}]   ;;  %s3559_s6 = inlined_call_operand.hbm [shape: bf16[256,256], index: 6, kind: output, shape index: {}]  }
   0x1   :  { %12 = vsyncpa [#allocation4], 0  ;;  %s3071_s21 = smov [#allocation2]   ;;  %s3023_s25 = scalar_lea.hbm %s3555_s2, 4096 }
   0x2   :  { %s22_s22 = sshll.u32 %s3071_s21, 4  ;;  %p3024_p0 = scmp.ne.s32.totalorder %s3555_s2, %s3023_s25  ;;  %s23_s22 = int_to_ptr.vmem [resolvable:$true] %s22_s22 }
   0x3   :  { %p3027_p1 = scmp.lt.u32.totalorder %s3023_s25, %s3555_s2 }
   0x5   :  { %p3029_p2 = pnand %p3027_p1, %p3024_p0 }
   0x7   :  { %3032 = shalt.err (!%p3029_p2)
}
   0x8   :  { %s3033_s30 = scalar_lea.vmem %s23_s22, 4096  ;;  %p3038_p4 = scmp.lt.s32.totalorder %s23_s22, %s23_s22 }
   0x9   :  { %p3034_p3 = scmp.ne.s32.totalorder %s23_s22, %s3033_s30  ;;  %p3039_p5 = scmp.lt.s32.totalorder %s3033_s30, %s3033_s30 }
   0xb   :  { %p3040_p6 = por %p3039_p5, %p3038_p4 }
   0xd   :  { %p3041_p7 = pnand %p3040_p6, %p3034_p3 }
   0xf   :  { %3044 = shalt.err (!%p3041_p7)
}
  0x10   :  { %s3072_s7 = smov 64   ;;  %s3073_s8 = smov 4  }
  0x11   :  { %28 = dma.hbm_to_vmem [thread:$0]  %s3555_s2, 4096, %s23_s22, [#allocation3], %s3072_s7, %s3072_s7, %s3073_s8  }
  0x12   :  { %3067 = dma.done.wait [#allocation3], 4096  }
  0x13   :  { %3068 = vsyncadd [#allocation3], 4294963200  ;;  %v2627_v0 = vld [vmem:[%s3554_s1] sm:$0xff]   ;;  %v2628_v1 = vld [vmem:[%s3554_s1 + $0x8] sm:$0xff]   ;;  %vm188_vm0 = vcmask 523264  }
  0x14   :  { %2372 = vmatprep.subr.bf16.mxu0 %v2627_v0  ;;  %v2629_v2 = vld [vmem:[%s3554_s1 + $0x10] sm:$0xff]   ;;  %v2631_v3 = vld [vmem:[%s3553_s0] sm:$0xff]   ;;  %v2630_v4 = vld [vmem:[%s3554_s1 + $0x18] sm:$0xff]  }
  0x15   :  { %2373 = vmatpush3.bf16.msra.mxu0 %v2627_v0  ;;  %2380 = vmatprep.mubr.msk.bf16.mxu0 %vm188_vm0, %v2631_v3  ;;  %v2632_v5 = vld [vmem:[%s3553_s0 + $0x8] sm:$0xff]   ;;  %v2633_v6 = vld [vmem:[%s3553_s0 + $0x10] sm:$0xff]   ;;  %v2634_v7 = vld [vmem:[%s3553_s0 + $0x18] sm:$0xff]  }
  0x16   :  { %2374 = vmatprep.subr.bf16.mxu0 %v2628_v1  ;;  %v2647_v8 = vld [vmem:[#allocation2] sm:$0xff]   ;;  %v2648_v10 = vld [vmem:[#allocation2 + $0x8] sm:$0xff]   ;;  %v2649_v11 = vld [vmem:[#allocation2 + $0x10] sm:$0xff]  }
  0x17   :  { %v2635_v9 = vld [vmem:[%s3553_s0 + $0x20] sm:$0xff]   ;;  %2412 = vmatprep.subr.bf16.mxu1 %v2647_v8  ;;  %v2636_v12 = vld [vmem:[%s3553_s0 + $0x28] sm:$0xff]   ;;  %v2637_v13 = vld [vmem:[%s3553_s0 + $0x30] sm:$0xff]  }
  0x18   :  { %2413 = vmatpush3.bf16.msra.mxu1 %v2647_v8  ;;  %v2638_v14 = vld [vmem:[%s3553_s0 + $0x38] sm:$0xff]   ;;  %v2639_v15 = vld [vmem:[%s3553_s0 + $0x40] sm:$0xff]   ;;  %v2640_v16 = vld [vmem:[%s3553_s0 + $0x48] sm:$0xff]  }
  0x19   :  { %2375 = vmatpush3.bf16.msra.mxu0 %v2628_v1  ;;  %2414 = vmatprep.subr.bf16.mxu1 %v2648_v10  ;;  %v2641_v17 = vld [vmem:[%s3553_s0 + $0x50] sm:$0xff]   ;;  %v2642_v18 = vld [vmem:[%s3553_s0 + $0x58] sm:$0xff]   ;;  %v2643_v19 = vld [vmem:[%s3553_s0 + $0x60] sm:$0xff]  }
  0x1a   :  { %2376 = vmatprep.subr.bf16.mxu0 %v2629_v2  ;;  %v2644_v20 = vld [vmem:[%s3553_s0 + $0x68] sm:$0xff]   ;;  %v2645_v21 = vld [vmem:[%s3553_s0 + $0x70] sm:$0xff]   ;;  %v2646_v22 = vld [vmem:[%s3553_s0 + $0x78] sm:$0xff]  }
  0x1b   :  { %v2650_v23 = vld [vmem:[#allocation2 + $0x18] sm:$0xff]   ;;  %v2651_v24 = vld [vmem:[#allocation2 + $0x20] sm:$0xff]   ;;  %v2652_v25 = vld [vmem:[#allocation2 + $0x28] sm:$0xff]  }
  0x1c   :  { %2415 = vmatpush3.bf16.msra.mxu1 %v2648_v10  ;;  %v2653_v26 = vld [vmem:[#allocation2 + $0x30] sm:$0xff]   ;;  %v2654_v27 = vld [vmem:[#allocation2 + $0x38] sm:$0xff]   ;;  %v2655_v28 = vld [vmem:[#allocation2 + $0x40] sm:$0xff]  }
  0x1d   :  { %2377 = vmatpush3.bf16.msra.mxu0 %v2629_v2  ;;  %2416 = vmatprep.subr.bf16.mxu1 %v2649_v11  ;;  %v2656_v29 = vld [vmem:[#allocation2 + $0x48] sm:$0xff]   ;;  %v2657_v30 = vld [vmem:[#allocation2 + $0x50] sm:$0xff]   ;;  %v2658_v31 = vld [vmem:[#allocation2 + $0x58] sm:$0xff]  }
  0x1e   :  { %2378 = vmatprep.subr.bf16.mxu0 %v2630_v4  ;;  %v2659_v32 = vld [vmem:[#allocation2 + $0x60] sm:$0xff]   ;;  %v2660_v33 = vld [vmem:[#allocation2 + $0x68] sm:$0xff]  }
  0x1f   :  { %v3204_v34 = vld [vmem:[%s3557_s4] ss:$0 sm:$0xff] }
  0x20   :  { %2417 = vmatpush3.bf16.msra.mxu1 %v2649_v11 }
  0x21   :  { %2379 = vmatpush3.bf16.msra.mxu0 %v2630_v4  ;;  %2418 = vmatprep.subr.bf16.mxu1 %v2650_v23 }
  0x22   :  { %2460 = vmatprep.subr.bf16.mxu0 %v2655_v28 }
  0x24   :  { %2381 = vmatmul.mubr.msk.bf16.vlgmr.msra.gmra.mrb[0].mxu0 %vm188_vm0, %v2632_v5  ;;  %2419 = vmatpush3.bf16.msra.mxu1 %v2650_v23 }
  0x25   :  { %2384 = vmatprep.mubr.msk.bf16.mxu0 %vm188_vm0, %v2633_v6  ;;  %2420 = vmatprep.subr.bf16.mxu1 %v2651_v24 }
  0x26   :  { %2461 = vmatpush3.bf16.msra.mxu0 %v2655_v28 }
  0x27   :  { %2462 = vmatprep.subr.bf16.mxu0 %v2656_v29 }
  0x28   :  { %2421 = vmatpush3.bf16.msra.mxu1 %v2651_v24 }
  0x29   :  { %2422 = vmatprep.subr.bf16.mxu1 %v2652_v25 }
  0x2a   :  { %2463 = vmatpush3.bf16.msra.mxu0 %v2656_v29 }
  0x2b   :  { %2464 = vmatprep.subr.bf16.mxu0 %v2657_v30 }
  0x2c   :  { %2385 = vmatmul.mubr.msk.bf16.gmra.mrb[4].mxu0 %vm188_vm0, %v2634_v7  ;;  %2423 = vmatpush3.bf16.msra.mxu1 %v2652_v25 }
  0x2d   :  { %2388 = vmatprep.mubr.msk.bf16.mxu0 %vm188_vm0, %v2635_v9  ;;  %2424 = vmatprep.subr.bf16.mxu1 %v2653_v26 }
  0x2e   :  { %2465 = vmatpush3.bf16.msra.mxu0 %v2657_v30 }
  0x2f   :  { %2466 = vmatprep.subr.bf16.mxu0 %v2658_v31 }
  0x30   :  { %2425 = vmatpush3.bf16.msra.mxu1 %v2653_v26 }
  0x31   :  { %2426 = vmatprep.subr.bf16.mxu1 %v2654_v27 }
  0x32   :  { %2467 = vmatpush3.bf16.msra.mxu0 %v2658_v31 }
  0x33   :  { %2468 = vmatprep.subr.bf16.mxu0 %v2659_v32 }
  0x34   :  { %2389 = vmatmul.mubr.msk.bf16.gmra.mrb[8].mxu0 %vm188_vm0, %v2636_v12  ;;  %2427 = vmatpush3.bf16.msra.mxu1 %v2654_v27 }
  0x35   :  { %2392 = vmatprep.mubr.msk.bf16.mxu0 %vm188_vm0, %v2637_v13 }
  0x36   :  { %2469 = vmatpush3.bf16.msra.mxu0 %v2659_v32 }
  0x37   :  { %2470 = vmatprep.subr.bf16.mxu0 %v2660_v33 }
  0x3a   :  { %2471 = vmatpush3.bf16.msra.mxu0 %v2660_v33 }
  0x3c   :  { %2393 = vmatmul.mubr.msk.bf16.gmra.mrb[12].mxu0 %vm188_vm0, %v2638_v14 }
  0x3d   :  { %2396 = vmatprep.mubr.msk.bf16.mxu0 %vm188_vm0, %v2639_v15 }
  0x44   :  { %2397 = vmatmul.mubr.msk.bf16.gmra.mrb[16].mxu0 %vm188_vm0, %v2640_v16 }
  0x45   :  { %2400 = vmatprep.mubr.msk.bf16.mxu0 %vm188_vm0, %v2641_v17 }
  0x4c   :  { %2401 = vmatmul.mubr.msk.bf16.gmra.mrb[20].mxu0 %vm188_vm0, %v2642_v18 }
  0x4d   :  { %2404 = vmatprep.mubr.msk.bf16.mxu0 %vm188_vm0, %v2643_v19 }
  0x54   :  { %2405 = vmatmul.mubr.msk.bf16.gmra.mrb[24].mxu0 %vm188_vm0, %v2644_v20 }
  0x55   :  { %2408 = vmatprep.mubr.msk.bf16.mxu0 %vm188_vm0, %v2645_v21 }
  0x5c   :  { %2409 = vmatmul.mubr.msk.bf16.gmra.mrb[28].mxu0 %vm188_vm0, %v2646_v22 }
  0xf7   :  { %v2382_v35 = vpop.f32.mrb[0].mxu0 }
  0xf8   :  { %v280_v36 = vadd.f32 %v2382_v35, %v3204_v34  ;;  %v271_v37 = vpop.f32.mrb[1].mxu0 }
  0xf9   :  { %v272_v38 = vadd.f32 %v3204_v34, %v271_v37  ;;  %v2383_v39 = vpop.f32.mrb[2].mxu0 }
  0xfa   :  { %2703 = vtanh.f32 %v280_v36  ;;  %v283_v40 = vadd.f32 %v2383_v39, %v3204_v34  ;;  %v274_v41 = vpop.f32.mrb[3].mxu0 }
  0xfb   :  { %2705 = vtanh.f32 %v272_v38  ;;  %v275_v42 = vadd.f32 %v3204_v34, %v274_v41 }
  0xfc   :  { %2707 = vtanh.f32 %v283_v40 }
  0xfd   :  { %2709 = vtanh.f32 %v275_v42 }
  0xff   :  { %v2386_v43 = vpop.f32.mrb[4].mxu0 }
 0x100   :  { %v296_v44 = vadd.f32 %v2386_v43, %v3204_v34  ;;  %v287_v45 = vpop.f32.mrb[5].mxu0 }
 0x101   :  { %v288_v46 = vadd.f32 %v3204_v34, %v287_v45  ;;  %v2387_v47 = vpop.f32.mrb[6].mxu0 }
 0x102   :  { %2711 = vtanh.f32 %v296_v44  ;;  %v299_v48 = vadd.f32 %v2387_v47, %v3204_v34  ;;  %v290_v49 = vpop.f32.mrb[7].mxu0 }
 0x103   :  { %2713 = vtanh.f32 %v288_v46  ;;  %v291_v50 = vadd.f32 %v3204_v34, %v290_v49 }
 0x104   :  { %v2704_v51 = vpop.eup %2703  ;;  %2715 = vtanh.f32 %v299_v48 }
 0x105   :  { %v2706_v52 = vpop.eup %2705  ;;  %2717 = vtanh.f32 %v291_v50 }
 0x106   :  { %v2708_v53 = vpop.eup %2707 }
 0x107   :  { %v2710_v54 = vpop.eup %2709  ;;  %v2390_v55 = vpop.f32.mrb[8].mxu0  ;;  %v431_v56 = vpack.c.bf16 %v2708_v53, %v2704_v51 }
 0x108   :  { %v312_v57 = vadd.f32 %v2390_v55, %v3204_v34  ;;  %v303_v58 = vpop.f32.mrb[9].mxu0  ;;  %v430_v59 = vpack.c.bf16 %v2710_v54, %v2706_v52 }
 0x109   :  { %v304_v60 = vadd.f32 %v3204_v34, %v303_v58  ;;  %v2391_v61 = vpop.f32.mrb[10].mxu0 }
 0x10a   :  { %2719 = vtanh.f32 %v312_v57  ;;  %v315_v62 = vadd.f32 %v2391_v61, %v3204_v34  ;;  %v306_v63 = vpop.f32.mrb[11].mxu0  ;;  %2428 = vmatprep.mubr.bf16.mxu1 %v430_v59 }
 0x10b   :  { %2721 = vtanh.f32 %v304_v60  ;;  %v307_v0 = vadd.f32 %v3204_v34, %v306_v63  ;;  %2429 = vmatmul.mubr.bf16.vlgmr.msra.gmra.mrb[0].mxu1 %v431_v56 }
 0x10c   :  { %v2712_v1 = vpop.eup %2711  ;;  %2723 = vtanh.f32 %v315_v62 }
 0x10d   :  { %v2714_v2 = vpop.eup %2713  ;;  %2725 = vtanh.f32 %v307_v0 }
 0x10e   :  { %v2716_v3 = vpop.eup %2715 }
 0x10f   :  { %v2718_v4 = vpop.eup %2717  ;;  %v2394_v5 = vpop.f32.mrb[12].mxu0  ;;  %v433_v6 = vpack.c.bf16 %v2716_v3, %v2712_v1 }
 0x110   :  { %v328_v7 = vadd.f32 %v2394_v5, %v3204_v34  ;;  %v319_v8 = vpop.f32.mrb[13].mxu0  ;;  %v432_v9 = vpack.c.bf16 %v2718_v4, %v2714_v2 }
 0x111   :  { %v320_v10 = vadd.f32 %v3204_v34, %v319_v8  ;;  %v2395_v11 = vpop.f32.mrb[14].mxu0 }
 0x112   :  { %2727 = vtanh.f32 %v328_v7  ;;  %v331_v12 = vadd.f32 %v2395_v11, %v3204_v34  ;;  %v322_v13 = vpop.f32.mrb[15].mxu0  ;;  %2432 = vmatprep.mubr.bf16.mxu1 %v432_v9 }
 0x113   :  { %2729 = vtanh.f32 %v320_v10  ;;  %v323_v14 = vadd.f32 %v3204_v34, %v322_v13  ;;  %2433 = vmatmul.mubr.bf16.gmra.mrb[4].mxu1 %v433_v6 }
 0x114   :  { %v2720_v15 = vpop.eup %2719  ;;  %2731 = vtanh.f32 %v331_v12 }
 0x115   :  { %v2722_v16 = vpop.eup %2721  ;;  %2733 = vtanh.f32 %v323_v14 }
 0x116   :  { %v2724_v17 = vpop.eup %2723 }
 0x117   :  { %v2726_v18 = vpop.eup %2725  ;;  %v2398_v19 = vpop.f32.mrb[16].mxu0  ;;  %v435_v20 = vpack.c.bf16 %v2724_v17, %v2720_v15 }
 0x118   :  { %v344_v21 = vadd.f32 %v2398_v19, %v3204_v34  ;;  %v335_v22 = vpop.f32.mrb[17].mxu0  ;;  %v434_v23 = vpack.c.bf16 %v2726_v18, %v2722_v16 }
 0x119   :  { %v336_v24 = vadd.f32 %v3204_v34, %v335_v22  ;;  %v2399_v25 = vpop.f32.mrb[18].mxu0  ;;  %v2664_v22 = vld [vmem:[#allocation2 + $0x88] sm:$0xff]  }
 0x11a   :  { %2735 = vtanh.f32 %v344_v21  ;;  %v347_v26 = vadd.f32 %v2399_v25, %v3204_v34  ;;  %v338_v27 = vpop.f32.mrb[19].mxu0  ;;  %2436 = vmatprep.mubr.bf16.mxu1 %v434_v23  ;;  %v2663_v21 = vld [vmem:[#allocation2 + $0x80] sm:$0xff]   ;;  %v2665_v23 = vld [vmem:[#allocation2 + $0x90] sm:$0xff]  }
 0x11b   :  { %2737 = vtanh.f32 %v336_v24  ;;  %v339_v28 = vadd.f32 %v3204_v34, %v338_v27  ;;  %2437 = vmatmul.mubr.bf16.gmra.mrb[8].mxu1 %v435_v20  ;;  %v2661_v20 = vld [vmem:[#allocation2 + $0x70] sm:$0xff]   ;;  %2508 = vmatprep.subr.bf16.mxu1 %v2663_v21  ;;  %v2666_v24 = vld [vmem:[#allocation2 + $0x98] sm:$0xff]   ;;  %v2667_v25 = vld [vmem:[#allocation2 + $0xa0] sm:$0xff]  }
 0x11c   :  { %v2728_v29 = vpop.eup %2727  ;;  %2739 = vtanh.f32 %v347_v26  ;;  %2472 = vmatprep.subr.bf16.mxu0 %v2661_v20  ;;  %2509 = vmatpush3.bf16.msra.mxu1 %v2663_v21  ;;  %v2668_v26 = vld [vmem:[#allocation2 + $0xa8] sm:$0xff]   ;;  %v3241_v27 = vld [vmem:[%s3557_s4 + $0x1] ss:$0 sm:$0xff] }
 0x11d   :  { %v2730_v30 = vpop.eup %2729  ;;  %2741 = vtanh.f32 %v339_v28  ;;  %2473 = vmatpush3.bf16.msra.mxu0 %v2661_v20  ;;  %2510 = vmatprep.subr.bf16.mxu1 %v2664_v22 }
 0x11e   :  { %v2732_v31 = vpop.eup %2731 }
 0x11f   :  { %v2734_v32 = vpop.eup %2733  ;;  %v2402_v33 = vpop.f32.mrb[20].mxu0  ;;  %v437_v35 = vpack.c.bf16 %v2732_v31, %v2728_v29 }
 0x120   :  { %v360_v36 = vadd.f32 %v2402_v33, %v3204_v34  ;;  %v351_v37 = vpop.f32.mrb[21].mxu0  ;;  %v436_v38 = vpack.c.bf16 %v2734_v32, %v2730_v30  ;;  %2511 = vmatpush3.bf16.msra.mxu1 %v2664_v22 }
 0x121   :  { %v352_v39 = vadd.f32 %v3204_v34, %v351_v37  ;;  %v2403_v40 = vpop.f32.mrb[22].mxu0  ;;  %2512 = vmatprep.subr.bf16.mxu1 %v2665_v23 }
 0x122   :  { %2743 = vtanh.f32 %v360_v36  ;;  %v363_v41 = vadd.f32 %v2403_v40, %v3204_v34  ;;  %v354_v42 = vpop.f32.mrb[23].mxu0  ;;  %2440 = vmatprep.mubr.bf16.mxu1 %v436_v38 }
 0x123   :  { %2745 = vtanh.f32 %v352_v39  ;;  %v355_v43 = vadd.f32 %v3204_v34, %v354_v42  ;;  %2441 = vmatmul.mubr.bf16.gmra.mrb[12].mxu1 %v437_v35 }
 0x124   :  { %v2736_v44 = vpop.eup %2735  ;;  %2747 = vtanh.f32 %v363_v41  ;;  %2513 = vmatpush3.bf16.msra.mxu1 %v2665_v23 }
 0x125   :  { %v2738_v45 = vpop.eup %2737  ;;  %2749 = vtanh.f32 %v355_v43  ;;  %2514 = vmatprep.subr.bf16.mxu1 %v2666_v24 }
 0x126   :  { %v2740_v46 = vpop.eup %2739 }
 0x127   :  { %v2742_v47 = vpop.eup %2741  ;;  %v439_v48 = vpack.c.bf16 %v2740_v46, %v2736_v44  ;;  %v2406_v49 = vpop.f32.mrb[24].mxu0 }
 0x128   :  { %v438_v50 = vpack.c.bf16 %v2742_v47, %v2738_v45  ;;  %v376_v51 = vadd.f32 %v2406_v49, %v3204_v34  ;;  %v367_v52 = vpop.f32.mrb[25].mxu0  ;;  %2515 = vmatpush3.bf16.msra.mxu1 %v2666_v24 }
 0x129   :  { %v368_v53 = vadd.f32 %v3204_v34, %v367_v52  ;;  %v2407_v54 = vpop.f32.mrb[26].mxu0  ;;  %2516 = vmatprep.subr.bf16.mxu1 %v2667_v25 }
 0x12a   :  { %2444 = vmatprep.mubr.bf16.mxu1 %v438_v50  ;;  %2751 = vtanh.f32 %v376_v51  ;;  %v379_v55 = vadd.f32 %v2407_v54, %v3204_v34  ;;  %v370_v56 = vpop.f32.mrb[27].mxu0 }
 0x12b   :  { %2445 = vmatmul.mubr.bf16.gmra.mrb[16].mxu1 %v439_v48  ;;  %2753 = vtanh.f32 %v368_v53  ;;  %v371_v57 = vadd.f32 %v3204_v34, %v370_v56 }
 0x12c   :  { %v2744_v58 = vpop.eup %2743  ;;  %2755 = vtanh.f32 %v379_v55  ;;  %2517 = vmatpush3.bf16.msra.mxu1 %v2667_v25 }
 0x12d   :  { %v2746_v59 = vpop.eup %2745  ;;  %2757 = vtanh.f32 %v371_v57  ;;  %2518 = vmatprep.subr.bf16.mxu1 %v2668_v26 }
 0x12e   :  { %v2748_v60 = vpop.eup %2747 }
 0x12f   :  { %v2750_v61 = vpop.eup %2749  ;;  %v441_v62 = vpack.c.bf16 %v2748_v60, %v2744_v58  ;;  %v2410_v63 = vpop.f32.mrb[28].mxu0 }
 0x130   :  { %v440_v0 = vpack.c.bf16 %v2750_v61, %v2746_v59  ;;  %v392_v1 = vadd.f32 %v2410_v63, %v3204_v34  ;;  %v383_v2 = vpop.f32.mrb[29].mxu0  ;;  %2519 = vmatpush3.bf16.msra.mxu1 %v2668_v26 }
 0x131   :  { %v384_v3 = vadd.f32 %v3204_v34, %v383_v2  ;;  %v2411_v4 = vpop.f32.mrb[30].mxu0 }
 0x132   :  { %2448 = vmatprep.mubr.bf16.mxu1 %v440_v0  ;;  %2759 = vtanh.f32 %v392_v1  ;;  %v395_v5 = vadd.f32 %v2411_v4, %v3204_v34  ;;  %v386_v6 = vpop.f32.mrb[31].mxu0 }
 0x133   :  { %2449 = vmatmul.mubr.bf16.gmra.mrb[20].mxu1 %v441_v62  ;;  %2761 = vtanh.f32 %v384_v3  ;;  %v387_v7 = vadd.f32 %v3204_v34, %v386_v6  ;;  %v2662_v34 = vld [vmem:[#allocation2 + $0x78] sm:$0xff]  }
 0x134   :  { %v2752_v8 = vpop.eup %2751  ;;  %2763 = vtanh.f32 %v395_v5  ;;  %2474 = vmatprep.subr.bf16.mxu0 %v2662_v34 }
 0x135   :  { %v2754_v9 = vpop.eup %2753  ;;  %2765 = vtanh.f32 %v387_v7  ;;  %2475 = vmatpush3.bf16.msra.mxu0 %v2662_v34 }
 0x136   :  { %v2756_v10 = vpop.eup %2755 }
 0x137   :  { %v2758_v11 = vpop.eup %2757  ;;  %v443_v12 = vpack.c.bf16 %v2756_v10, %v2752_v8 }
 0x138   :  { %v442_v13 = vpack.c.bf16 %v2758_v11, %v2754_v9 }
 0x13a   :  { %2452 = vmatprep.mubr.bf16.mxu1 %v442_v13 }
 0x13b   :  { %2453 = vmatmul.mubr.bf16.gmra.mrb[24].mxu1 %v443_v12 }
 0x13c   :  { %v2760_v14 = vpop.eup %2759 }
 0x13d   :  { %v2762_v15 = vpop.eup %2761 }
 0x13e   :  { %v2764_v16 = vpop.eup %2763 }
 0x13f   :  { %v2766_v17 = vpop.eup %2765  ;;  %v445_v18 = vpack.c.bf16 %v2764_v16, %v2760_v14 }
 0x140   :  { %v444_v19 = vpack.c.bf16 %v2766_v17, %v2762_v15 }
 0x142   :  { %2456 = vmatprep.mubr.bf16.mxu1 %v444_v19 }
 0x143   :  { %2457 = vmatmul.mubr.bf16.gmra.mrb[28].mxu1 %v445_v18 }
 0x1de   :  { %v2430_v28 = vpop.f32.mrb[0].mxu1 }
 0x1df   :  { %v558_v29 = vadd.f32 %v2430_v28, %v3241_v27  ;;  %v549_v30 = vpop.f32.mrb[1].mxu1 }
 0x1e0   :  { %v550_v31 = vadd.f32 %v3241_v27, %v549_v30  ;;  %v2431_v32 = vpop.f32.mrb[2].mxu1 }
 0x1e1   :  { %2767 = vtanh.f32 %v558_v29  ;;  %v561_v33 = vadd.f32 %v2431_v32, %v3241_v27  ;;  %v552_v35 = vpop.f32.mrb[3].mxu1 }
 0x1e2   :  { %2769 = vtanh.f32 %v550_v31  ;;  %v553_v36 = vadd.f32 %v3241_v27, %v552_v35 }
 0x1e3   :  { %2771 = vtanh.f32 %v561_v33 }
 0x1e4   :  { %2773 = vtanh.f32 %v553_v36 }
 0x1e6   :  { %v2434_v37 = vpop.f32.mrb[4].mxu1 }
 0x1e7   :  { %v574_v38 = vadd.f32 %v2434_v37, %v3241_v27  ;;  %v565_v39 = vpop.f32.mrb[5].mxu1 }
 0x1e8   :  { %v566_v40 = vadd.f32 %v3241_v27, %v565_v39  ;;  %v2435_v41 = vpop.f32.mrb[6].mxu1 }
 0x1e9   :  { %2775 = vtanh.f32 %v574_v38  ;;  %v577_v42 = vadd.f32 %v2435_v41, %v3241_v27  ;;  %v568_v43 = vpop.f32.mrb[7].mxu1 }
 0x1ea   :  { %2777 = vtanh.f32 %v566_v40  ;;  %v569_v44 = vadd.f32 %v3241_v27, %v568_v43 }
 0x1eb   :  { %v2768_v45 = vpop.eup %2767  ;;  %2779 = vtanh.f32 %v577_v42 }
 0x1ec   :  { %v2770_v46 = vpop.eup %2769  ;;  %2781 = vtanh.f32 %v569_v44 }
 0x1ed   :  { %v2772_v47 = vpop.eup %2771 }
 0x1ee   :  { %v2774_v48 = vpop.eup %2773  ;;  %v2438_v49 = vpop.f32.mrb[8].mxu1  ;;  %v709_v50 = vpack.c.bf16 %v2772_v47, %v2768_v45 }
 0x1ef   :  { %v590_v51 = vadd.f32 %v2438_v49, %v3241_v27  ;;  %v581_v52 = vpop.f32.mrb[9].mxu1  ;;  %v708_v53 = vpack.c.bf16 %v2774_v48, %v2770_v46 }
 0x1f0   :  { %v582_v54 = vadd.f32 %v3241_v27, %v581_v52  ;;  %v2439_v55 = vpop.f32.mrb[10].mxu1 }
 0x1f1   :  { %2783 = vtanh.f32 %v590_v51  ;;  %v593_v56 = vadd.f32 %v2439_v55, %v3241_v27  ;;  %v584_v57 = vpop.f32.mrb[11].mxu1  ;;  %2476 = vmatprep.mubr.bf16.mxu0 %v708_v53 }
 0x1f2   :  { %2785 = vtanh.f32 %v582_v54  ;;  %v585_v58 = vadd.f32 %v3241_v27, %v584_v57  ;;  %2477 = vmatmul.mubr.bf16.vlgmr.msra.gmra.mrb[32].mxu0 %v709_v50 }
 0x1f3   :  { %v2776_v59 = vpop.eup %2775  ;;  %2787 = vtanh.f32 %v593_v56 }
 0x1f4   :  { %v2778_v60 = vpop.eup %2777  ;;  %2789 = vtanh.f32 %v585_v58 }
 0x1f5   :  { %v2780_v61 = vpop.eup %2779 }
 0x1f6   :  { %v2782_v62 = vpop.eup %2781  ;;  %v2442_v63 = vpop.f32.mrb[12].mxu1  ;;  %v711_v0 = vpack.c.bf16 %v2780_v61, %v2776_v59 }
 0x1f7   :  { %v606_v1 = vadd.f32 %v2442_v63, %v3241_v27  ;;  %v597_v2 = vpop.f32.mrb[13].mxu1  ;;  %v710_v3 = vpack.c.bf16 %v2782_v62, %v2778_v60 }
 0x1f8   :  { %v598_v4 = vadd.f32 %v3241_v27, %v597_v2  ;;  %v2443_v5 = vpop.f32.mrb[14].mxu1 }
 0x1f9   :  { %2791 = vtanh.f32 %v606_v1  ;;  %v609_v6 = vadd.f32 %v2443_v5, %v3241_v27  ;;  %v600_v7 = vpop.f32.mrb[15].mxu1  ;;  %2480 = vmatprep.mubr.bf16.mxu0 %v710_v3 }
 0x1fa   :  { %2793 = vtanh.f32 %v598_v4  ;;  %v601_v8 = vadd.f32 %v3241_v27, %v600_v7  ;;  %2481 = vmatmul.mubr.bf16.gmra.mrb[36].mxu0 %v711_v0 }
 0x1fb   :  { %v2784_v9 = vpop.eup %2783  ;;  %2795 = vtanh.f32 %v609_v6 }
 0x1fc   :  { %v2786_v10 = vpop.eup %2785  ;;  %2797 = vtanh.f32 %v601_v8 }
 0x1fd   :  { %v2788_v11 = vpop.eup %2787 }
 0x1fe   :  { %v2790_v12 = vpop.eup %2789  ;;  %v2446_v13 = vpop.f32.mrb[16].mxu1  ;;  %v713_v14 = vpack.c.bf16 %v2788_v11, %v2784_v9 }
 0x1ff   :  { %v622_v15 = vadd.f32 %v2446_v13, %v3241_v27  ;;  %v613_v16 = vpop.f32.mrb[17].mxu1  ;;  %v712_v17 = vpack.c.bf16 %v2790_v12, %v2786_v10 }
 0x200   :  { %v614_v18 = vadd.f32 %v3241_v27, %v613_v16  ;;  %v2447_v19 = vpop.f32.mrb[18].mxu1  ;;  %v2672_v16 = vld [vmem:[#allocation2 + $0xc8] sm:$0xff]  }
 0x201   :  { %2799 = vtanh.f32 %v622_v15  ;;  %v625_v20 = vadd.f32 %v2447_v19, %v3241_v27  ;;  %v616_v34 = vpop.f32.mrb[19].mxu1  ;;  %2484 = vmatprep.mubr.bf16.mxu0 %v712_v17  ;;  %v2671_v15 = vld [vmem:[#allocation2 + $0xc0] sm:$0xff]   ;;  %v2673_v17 = vld [vmem:[#allocation2 + $0xd0] sm:$0xff]  }
 0x202   :  { %2801 = vtanh.f32 %v614_v18  ;;  %v617_v21 = vadd.f32 %v3241_v27, %v616_v34  ;;  %2485 = vmatmul.mubr.bf16.gmra.mrb[40].mxu0 %v713_v14  ;;  %v2669_v14 = vld [vmem:[#allocation2 + $0xb0] sm:$0xff]   ;;  %2556 = vmatprep.subr.bf16.mxu0 %v2671_v15  ;;  %v2674_v18 = vld [vmem:[#allocation2 + $0xd8] sm:$0xff]   ;;  %v2675_v19 = vld [vmem:[#allocation2 + $0xe0] sm:$0xff]  }
 0x203   :  { %v2792_v22 = vpop.eup %2791  ;;  %2803 = vtanh.f32 %v625_v20  ;;  %2520 = vmatprep.subr.bf16.mxu1 %v2669_v14  ;;  %2557 = vmatpush3.bf16.msra.mxu0 %v2671_v15  ;;  %v2676_v20 = vld [vmem:[#allocation2 + $0xe8] sm:$0xff]   ;;  %v3278_v34 = vld [vmem:[%s3557_s4 + $0x2] ss:$0 sm:$0xff] }
 0x204   :  { %v2794_v23 = vpop.eup %2793  ;;  %2805 = vtanh.f32 %v617_v21  ;;  %2521 = vmatpush3.bf16.msra.mxu1 %v2669_v14  ;;  %2558 = vmatprep.subr.bf16.mxu0 %v2672_v16 }
 0x205   :  { %v2796_v24 = vpop.eup %2795 }
 0x206   :  { %v2798_v25 = vpop.eup %2797  ;;  %v2450_v26 = vpop.f32.mrb[20].mxu1  ;;  %v715_v28 = vpack.c.bf16 %v2796_v24, %v2792_v22 }
 0x207   :  { %v638_v29 = vadd.f32 %v2450_v26, %v3241_v27  ;;  %v629_v30 = vpop.f32.mrb[21].mxu1  ;;  %v714_v31 = vpack.c.bf16 %v2798_v25, %v2794_v23  ;;  %2559 = vmatpush3.bf16.msra.mxu0 %v2672_v16 }
 0x208   :  { %v630_v32 = vadd.f32 %v3241_v27, %v629_v30  ;;  %v2451_v33 = vpop.f32.mrb[22].mxu1  ;;  %2560 = vmatprep.subr.bf16.mxu0 %v2673_v17 }
 0x209   :  { %2807 = vtanh.f32 %v638_v29  ;;  %v641_v35 = vadd.f32 %v2451_v33, %v3241_v27  ;;  %v632_v36 = vpop.f32.mrb[23].mxu1  ;;  %2488 = vmatprep.mubr.bf16.mxu0 %v714_v31 }
 0x20a   :  { %2809 = vtanh.f32 %v630_v32  ;;  %v633_v37 = vadd.f32 %v3241_v27, %v632_v36  ;;  %2489 = vmatmul.mubr.bf16.gmra.mrb[44].mxu0 %v715_v28 }
 0x20b   :  { %v2800_v38 = vpop.eup %2799  ;;  %2811 = vtanh.f32 %v641_v35  ;;  %2561 = vmatpush3.bf16.msra.mxu0 %v2673_v17 }
 0x20c   :  { %v2802_v39 = vpop.eup %2801  ;;  %2813 = vtanh.f32 %v633_v37  ;;  %2562 = vmatprep.subr.bf16.mxu0 %v2674_v18 }
 0x20d   :  { %v2804_v40 = vpop.eup %2803 }
 0x20e   :  { %v2806_v41 = vpop.eup %2805  ;;  %v717_v42 = vpack.c.bf16 %v2804_v40, %v2800_v38  ;;  %v2454_v43 = vpop.f32.mrb[24].mxu1 }
 0x20f   :  { %v716_v44 = vpack.c.bf16 %v2806_v41, %v2802_v39  ;;  %v654_v45 = vadd.f32 %v2454_v43, %v3241_v27  ;;  %v645_v46 = vpop.f32.mrb[25].mxu1  ;;  %2563 = vmatpush3.bf16.msra.mxu0 %v2674_v18 }
 0x210   :  { %v646_v47 = vadd.f32 %v3241_v27, %v645_v46  ;;  %v2455_v48 = vpop.f32.mrb[26].mxu1  ;;  %2564 = vmatprep.subr.bf16.mxu0 %v2675_v19 }
 0x211   :  { %2492 = vmatprep.mubr.bf16.mxu0 %v716_v44  ;;  %2815 = vtanh.f32 %v654_v45  ;;  %v657_v49 = vadd.f32 %v2455_v48, %v3241_v27  ;;  %v648_v50 = vpop.f32.mrb[27].mxu1 }
 0x212   :  { %2493 = vmatmul.mubr.bf16.gmra.mrb[48].mxu0 %v717_v42  ;;  %2817 = vtanh.f32 %v646_v47  ;;  %v649_v51 = vadd.f32 %v3241_v27, %v648_v50 }
 0x213   :  { %v2808_v52 = vpop.eup %2807  ;;  %2819 = vtanh.f32 %v657_v49  ;;  %2565 = vmatpush3.bf16.msra.mxu0 %v2675_v19 }
 0x214   :  { %v2810_v53 = vpop.eup %2809  ;;  %2821 = vtanh.f32 %v649_v51  ;;  %2566 = vmatprep.subr.bf16.mxu0 %v2676_v20 }
 0x215   :  { %v2812_v54 = vpop.eup %2811 }
 0x216   :  { %v2814_v55 = vpop.eup %2813  ;;  %v719_v56 = vpack.c.bf16 %v2812_v54, %v2808_v52  ;;  %v2458_v57 = vpop.f32.mrb[28].mxu1 }
 0x217   :  { %v718_v58 = vpack.c.bf16 %v2814_v55, %v2810_v53  ;;  %v670_v59 = vadd.f32 %v2458_v57, %v3241_v27  ;;  %v661_v60 = vpop.f32.mrb[29].mxu1  ;;  %2567 = vmatpush3.bf16.msra.mxu0 %v2676_v20 }
 0x218   :  { %v662_v61 = vadd.f32 %v3241_v27, %v661_v60  ;;  %v2459_v62 = vpop.f32.mrb[30].mxu1 }
 0x219   :  { %2496 = vmatprep.mubr.bf16.mxu0 %v718_v58  ;;  %2823 = vtanh.f32 %v670_v59  ;;  %v673_v63 = vadd.f32 %v2459_v62, %v3241_v27  ;;  %v664_v0 = vpop.f32.mrb[31].mxu1 }
 0x21a   :  { %2497 = vmatmul.mubr.bf16.gmra.mrb[52].mxu0 %v719_v56  ;;  %2825 = vtanh.f32 %v662_v61  ;;  %v665_v1 = vadd.f32 %v3241_v27, %v664_v0  ;;  %v2670_v27 = vld [vmem:[#allocation2 + $0xb8] sm:$0xff]  }
 0x21b   :  { %v2816_v2 = vpop.eup %2815  ;;  %2827 = vtanh.f32 %v673_v63  ;;  %2522 = vmatprep.subr.bf16.mxu1 %v2670_v27 }
 0x21c   :  { %v2818_v3 = vpop.eup %2817  ;;  %2829 = vtanh.f32 %v665_v1  ;;  %2523 = vmatpush3.bf16.msra.mxu1 %v2670_v27 }
 0x21d   :  { %v2820_v4 = vpop.eup %2819 }
 0x21e   :  { %v2822_v5 = vpop.eup %2821  ;;  %v721_v6 = vpack.c.bf16 %v2820_v4, %v2816_v2 }
 0x21f   :  { %v720_v7 = vpack.c.bf16 %v2822_v5, %v2818_v3 }
 0x221   :  { %2500 = vmatprep.mubr.bf16.mxu0 %v720_v7 }
 0x222   :  { %2501 = vmatmul.mubr.bf16.gmra.mrb[56].mxu0 %v721_v6 }
 0x223   :  { %v2824_v8 = vpop.eup %2823 }
 0x224   :  { %v2826_v9 = vpop.eup %2825 }
 0x225   :  { %v2828_v10 = vpop.eup %2827 }
 0x226   :  { %v2830_v11 = vpop.eup %2829  ;;  %v723_v12 = vpack.c.bf16 %v2828_v10, %v2824_v8 }
 0x227   :  { %v722_v13 = vpack.c.bf16 %v2830_v11, %v2826_v9 }
 0x229   :  { %2504 = vmatprep.mubr.bf16.mxu0 %v722_v13 }
 0x22a   :  { %2505 = vmatmul.mubr.bf16.gmra.mrb[60].mxu0 %v723_v12 }
 0x2c5   :  { %v2478_v21 = vpop.f32.mrb[32].mxu0 }
 0x2c6   :  { %v837_v22 = vadd.f32 %v2478_v21, %v3278_v34  ;;  %v828_v23 = vpop.f32.mrb[33].mxu0 }
 0x2c7   :  { %v829_v24 = vadd.f32 %v3278_v34, %v828_v23  ;;  %v2479_v25 = vpop.f32.mrb[34].mxu0 }
 0x2c8   :  { %2831 = vtanh.f32 %v837_v22  ;;  %v840_v26 = vadd.f32 %v2479_v25, %v3278_v34  ;;  %v831_v28 = vpop.f32.mrb[35].mxu0 }
 0x2c9   :  { %2833 = vtanh.f32 %v829_v24  ;;  %v832_v29 = vadd.f32 %v3278_v34, %v831_v28 }
 0x2ca   :  { %2835 = vtanh.f32 %v840_v26 }
 0x2cb   :  { %2837 = vtanh.f32 %v832_v29 }
 0x2cd   :  { %v2482_v30 = vpop.f32.mrb[36].mxu0 }
 0x2ce   :  { %v853_v31 = vadd.f32 %v2482_v30, %v3278_v34  ;;  %v844_v32 = vpop.f32.mrb[37].mxu0 }
 0x2cf   :  { %v845_v33 = vadd.f32 %v3278_v34, %v844_v32  ;;  %v2483_v35 = vpop.f32.mrb[38].mxu0 }
 0x2d0   :  { %2839 = vtanh.f32 %v853_v31  ;;  %v856_v36 = vadd.f32 %v2483_v35, %v3278_v34  ;;  %v847_v37 = vpop.f32.mrb[39].mxu0 }
 0x2d1   :  { %2841 = vtanh.f32 %v845_v33  ;;  %v848_v38 = vadd.f32 %v3278_v34, %v847_v37 }
 0x2d2   :  { %v2832_v39 = vpop.eup %2831  ;;  %2843 = vtanh.f32 %v856_v36 }
 0x2d3   :  { %v2834_v40 = vpop.eup %2833  ;;  %2845 = vtanh.f32 %v848_v38 }
 0x2d4   :  { %v2836_v41 = vpop.eup %2835 }
 0x2d5   :  { %v2838_v42 = vpop.eup %2837  ;;  %v2486_v43 = vpop.f32.mrb[40].mxu0  ;;  %v988_v44 = vpack.c.bf16 %v2836_v41, %v2832_v39 }
 0x2d6   :  { %v869_v45 = vadd.f32 %v2486_v43, %v3278_v34  ;;  %v860_v46 = vpop.f32.mrb[41].mxu0  ;;  %v987_v47 = vpack.c.bf16 %v2838_v42, %v2834_v40 }
 0x2d7   :  { %v861_v48 = vadd.f32 %v3278_v34, %v860_v46  ;;  %v2487_v49 = vpop.f32.mrb[42].mxu0 }
 0x2d8   :  { %2847 = vtanh.f32 %v869_v45  ;;  %v872_v50 = vadd.f32 %v2487_v49, %v3278_v34  ;;  %v863_v51 = vpop.f32.mrb[43].mxu0  ;;  %2524 = vmatprep.mubr.bf16.mxu1 %v987_v47 }
 0x2d9   :  { %2849 = vtanh.f32 %v861_v48  ;;  %v864_v52 = vadd.f32 %v3278_v34, %v863_v51  ;;  %2525 = vmatmul.mubr.bf16.vlgmr.msra.gmra.mrb[32].mxu1 %v988_v44 }
 0x2da   :  { %v2840_v53 = vpop.eup %2839  ;;  %2851 = vtanh.f32 %v872_v50 }
 0x2db   :  { %v2842_v54 = vpop.eup %2841  ;;  %2853 = vtanh.f32 %v864_v52 }
 0x2dc   :  { %v2844_v55 = vpop.eup %2843 }
 0x2dd   :  { %v2846_v56 = vpop.eup %2845  ;;  %v2490_v57 = vpop.f32.mrb[44].mxu0  ;;  %v990_v58 = vpack.c.bf16 %v2844_v55, %v2840_v53 }
 0x2de   :  { %v885_v59 = vadd.f32 %v2490_v57, %v3278_v34  ;;  %v876_v60 = vpop.f32.mrb[45].mxu0  ;;  %v989_v61 = vpack.c.bf16 %v2846_v56, %v2842_v54 }
 0x2df   :  { %v877_v62 = vadd.f32 %v3278_v34, %v876_v60  ;;  %v2491_v63 = vpop.f32.mrb[46].mxu0 }
 0x2e0   :  { %2855 = vtanh.f32 %v885_v59  ;;  %v888_v0 = vadd.f32 %v2491_v63, %v3278_v34  ;;  %v879_v1 = vpop.f32.mrb[47].mxu0  ;;  %2528 = vmatprep.mubr.bf16.mxu1 %v989_v61 }
 0x2e1   :  { %2857 = vtanh.f32 %v877_v62  ;;  %v880_v2 = vadd.f32 %v3278_v34, %v879_v1  ;;  %2529 = vmatmul.mubr.bf16.gmra.mrb[36].mxu1 %v990_v58 }
 0x2e2   :  { %v2848_v3 = vpop.eup %2847  ;;  %2859 = vtanh.f32 %v888_v0 }
 0x2e3   :  { %v2850_v4 = vpop.eup %2849  ;;  %2861 = vtanh.f32 %v880_v2 }
 0x2e4   :  { %v2852_v5 = vpop.eup %2851 }
 0x2e5   :  { %v2854_v6 = vpop.eup %2853  ;;  %v2494_v7 = vpop.f32.mrb[48].mxu0  ;;  %v992_v8 = vpack.c.bf16 %v2852_v5, %v2848_v3 }
 0x2e6   :  { %v901_v9 = vadd.f32 %v2494_v7, %v3278_v34  ;;  %v892_v10 = vpop.f32.mrb[49].mxu0  ;;  %v991_v11 = vpack.c.bf16 %v2854_v6, %v2850_v4 }
 0x2e7   :  { %v893_v12 = vadd.f32 %v3278_v34, %v892_v10  ;;  %v2495_v13 = vpop.f32.mrb[50].mxu0  ;;  %v2679_v10 = vld [vmem:[%s3556_s3] ss:$8 sps:$4 sm:$0xff]  }
 0x2e8   :  { %2863 = vtanh.f32 %v901_v9  ;;  %v904_v14 = vadd.f32 %v2495_v13, %v3278_v34  ;;  %v895_v27 = vpop.f32.mrb[51].mxu0  ;;  %2532 = vmatprep.mubr.bf16.mxu1 %v991_v11  ;;  %v2681_v9 = vld [vmem:[%s3556_s3 + $0x4] ss:$8 sps:$4 sm:$0xff]   ;;  %v2684_v11 = vld [vmem:[%s3556_s3 + $0x14] ss:$8 sps:$4 sm:$0xff]  }
 0x2e9   :  { %2865 = vtanh.f32 %v893_v12  ;;  %v896_v15 = vadd.f32 %v3278_v34, %v895_v27  ;;  %2533 = vmatmul.mubr.bf16.gmra.mrb[40].mxu1 %v992_v8  ;;  %v2677_v8 = vld [vmem:[#allocation2 + $0xf0] sm:$0xff]   ;;  %2604 = vmatprep.subr.bf16.mxu1 %v2681_v9  ;;  %v3329_v13 = vld [vmem:[%s3556_s3 + $0x24] ss:$8 sps:$4 sm:$0xff]  }
 0x2ea   :  { %v2856_v16 = vpop.eup %2855  ;;  %2867 = vtanh.f32 %v904_v14  ;;  %2568 = vmatprep.subr.bf16.mxu0 %v2677_v8  ;;  %2612 = vmatpush1.bf16.msra.mxu1 %v2679_v10  ;;  %v3324_v12 = vld [vmem:[%s3556_s3 + $0x10] ss:$8 sps:$4 sm:$0xff]   ;;  %v3336_v14 = vld [vmem:[%s3556_s3 + $0x20] ss:$8 sps:$4 sm:$0xff]   ;;  %v3341_v27 = vld [vmem:[%s3556_s3 + $0x34] ss:$8 sps:$4 sm:$0xff]  }
 0x2eb   :  { %v2858_v17 = vpop.eup %2857  ;;  %2869 = vtanh.f32 %v896_v15  ;;  %2569 = vmatpush3.bf16.msra.mxu0 %v2677_v8  ;;  %2605 = vmatprep.subr.bf16.mxu1 %v2684_v11  ;;  %v3348_v15 = vld [vmem:[%s3556_s3 + $0x30] ss:$8 sps:$4 sm:$0xff]  }
 0x2ec   :  { %v2860_v18 = vpop.eup %2859 }
 0x2ed   :  { %v2862_v19 = vpop.eup %2861  ;;  %v2498_v20 = vpop.f32.mrb[52].mxu0  ;;  %v994_v21 = vpack.c.bf16 %v2860_v18, %v2856_v16  ;;  %v3354_v16 = vld [vmem:[%s3557_s4 + $0x3] ss:$0 sm:$0xff] }
 0x2ee   :  { %v917_v22 = vadd.f32 %v2498_v20, %v3278_v34  ;;  %v908_v23 = vpop.f32.mrb[53].mxu0  ;;  %v993_v24 = vpack.c.bf16 %v2862_v19, %v2858_v17  ;;  %2613 = vmatpush1.bf16.msra.mxu1 %v3324_v12 }
 0x2ef   :  { %v909_v25 = vadd.f32 %v3278_v34, %v908_v23  ;;  %v2499_v26 = vpop.f32.mrb[54].mxu0  ;;  %2606 = vmatprep.subr.bf16.mxu1 %v3329_v13 }
 0x2f0   :  { %2871 = vtanh.f32 %v917_v22  ;;  %v920_v28 = vadd.f32 %v2499_v26, %v3278_v34  ;;  %v911_v29 = vpop.f32.mrb[55].mxu0  ;;  %2536 = vmatprep.mubr.bf16.mxu1 %v993_v24 }
 0x2f1   :  { %2873 = vtanh.f32 %v909_v25  ;;  %v912_v30 = vadd.f32 %v3278_v34, %v911_v29  ;;  %2537 = vmatmul.mubr.bf16.gmra.mrb[44].mxu1 %v994_v21 }
 0x2f2   :  { %v2864_v31 = vpop.eup %2863  ;;  %2875 = vtanh.f32 %v920_v28  ;;  %2614 = vmatpush1.bf16.msra.mxu1 %v3336_v14 }
 0x2f3   :  { %v2866_v32 = vpop.eup %2865  ;;  %2877 = vtanh.f32 %v912_v30  ;;  %2607 = vmatprep.subr.bf16.mxu1 %v3341_v27 }
 0x2f4   :  { %v2868_v33 = vpop.eup %2867 }
 0x2f5   :  { %v2870_v35 = vpop.eup %2869  ;;  %v996_v36 = vpack.c.bf16 %v2868_v33, %v2864_v31  ;;  %v2502_v37 = vpop.f32.mrb[56].mxu0 }
 0x2f6   :  { %v995_v38 = vpack.c.bf16 %v2870_v35, %v2866_v32  ;;  %v933_v39 = vadd.f32 %v2502_v37, %v3278_v34  ;;  %v924_v40 = vpop.f32.mrb[57].mxu0  ;;  %2615 = vmatpush1.bf16.msra.mxu1 %v3348_v15 }
 0x2f7   :  { %v925_v41 = vadd.f32 %v3278_v34, %v924_v40  ;;  %v2503_v42 = vpop.f32.mrb[58].mxu0 }
 0x2f8   :  { %2540 = vmatprep.mubr.bf16.mxu1 %v995_v38  ;;  %2879 = vtanh.f32 %v933_v39  ;;  %v936_v43 = vadd.f32 %v2503_v42, %v3278_v34  ;;  %v927_v44 = vpop.f32.mrb[59].mxu0 }
 0x2f9   :  { %2541 = vmatmul.mubr.bf16.gmra.mrb[48].mxu1 %v996_v36  ;;  %2881 = vtanh.f32 %v925_v41  ;;  %v928_v45 = vadd.f32 %v3278_v34, %v927_v44 }
 0x2fa   :  { %v2872_v46 = vpop.eup %2871  ;;  %2883 = vtanh.f32 %v936_v43 }
 0x2fb   :  { %v2874_v47 = vpop.eup %2873  ;;  %2885 = vtanh.f32 %v928_v45 }
 0x2fc   :  { %v2876_v48 = vpop.eup %2875 }
 0x2fd   :  { %v2878_v49 = vpop.eup %2877  ;;  %v998_v50 = vpack.c.bf16 %v2876_v48, %v2872_v46  ;;  %v2506_v51 = vpop.f32.mrb[60].mxu0 }
 0x2fe   :  { %v997_v52 = vpack.c.bf16 %v2878_v49, %v2874_v47  ;;  %v949_v53 = vadd.f32 %v2506_v51, %v3278_v34  ;;  %v940_v54 = vpop.f32.mrb[61].mxu0 }
 0x2ff   :  { %v941_v55 = vadd.f32 %v3278_v34, %v940_v54  ;;  %v2507_v56 = vpop.f32.mrb[62].mxu0 }
 0x300   :  { %2544 = vmatprep.mubr.bf16.mxu1 %v997_v52  ;;  %2887 = vtanh.f32 %v949_v53  ;;  %v952_v57 = vadd.f32 %v2507_v56, %v3278_v34  ;;  %v943_v58 = vpop.f32.mrb[63].mxu0 }
 0x301   :  { %2545 = vmatmul.mubr.bf16.gmra.mrb[52].mxu1 %v998_v50  ;;  %2889 = vtanh.f32 %v941_v55  ;;  %v944_v59 = vadd.f32 %v3278_v34, %v943_v58  ;;  %v2678_v34 = vld [vmem:[#allocation2 + $0xf8] sm:$0xff]  }
 0x302   :  { %v2880_v60 = vpop.eup %2879  ;;  %2891 = vtanh.f32 %v952_v57  ;;  %2570 = vmatprep.subr.bf16.mxu0 %v2678_v34 }
 0x303   :  { %v2882_v61 = vpop.eup %2881  ;;  %2893 = vtanh.f32 %v944_v59  ;;  %2571 = vmatpush3.bf16.msra.mxu0 %v2678_v34 }
 0x304   :  { %v2884_v62 = vpop.eup %2883  ;;  %1669 = vmatprep.subr.bf16.mxu0 %v2681_v9 }
 0x305   :  { %v2886_v63 = vpop.eup %2885  ;;  %v1000_v0 = vpack.c.bf16 %v2884_v62, %v2880_v60 }
 0x306   :  { %v999_v1 = vpack.c.bf16 %v2886_v63, %v2882_v61 }
 0x308   :  { %2548 = vmatprep.mubr.bf16.mxu1 %v999_v1 }
 0x309   :  { %2549 = vmatmul.mubr.bf16.gmra.mrb[56].mxu1 %v1000_v0 }
 0x30a   :  { %v2888_v2 = vpop.eup %2887 }
 0x30b   :  { %v2890_v3 = vpop.eup %2889 }
 0x30c   :  { %v2892_v4 = vpop.eup %2891 }
 0x30d   :  { %v2894_v5 = vpop.eup %2893  ;;  %v1002_v6 = vpack.c.bf16 %v2892_v4, %v2888_v2 }
 0x30e   :  { %v1001_v7 = vpack.c.bf16 %v2894_v5, %v2890_v3 }
 0x310   :  { %2552 = vmatprep.mubr.bf16.mxu1 %v1001_v7 }
 0x311   :  { %2553 = vmatmul.mubr.bf16.gmra.mrb[60].mxu1 %v1002_v6 }
 0x3ac   :  { %v2526_v17 = vpop.f32.mrb[32].mxu1 }
 0x3ad   :  { %v1116_v18 = vadd.f32 %v2526_v17, %v3354_v16  ;;  %v1107_v19 = vpop.f32.mrb[33].mxu1 }
 0x3ae   :  { %v1108_v20 = vadd.f32 %v3354_v16, %v1107_v19  ;;  %v2527_v21 = vpop.f32.mrb[34].mxu1 }
 0x3af   :  { %2895 = vtanh.f32 %v1116_v18  ;;  %v1119_v22 = vadd.f32 %v2527_v21, %v3354_v16  ;;  %v1110_v23 = vpop.f32.mrb[35].mxu1 }
 0x3b0   :  { %2897 = vtanh.f32 %v1108_v20  ;;  %v1111_v24 = vadd.f32 %v3354_v16, %v1110_v23 }
 0x3b1   :  { %2899 = vtanh.f32 %v1119_v22 }
 0x3b2   :  { %2901 = vtanh.f32 %v1111_v24 }
 0x3b4   :  { %v2530_v25 = vpop.f32.mrb[36].mxu1 }
 0x3b5   :  { %v1132_v26 = vadd.f32 %v2530_v25, %v3354_v16  ;;  %v1123_v28 = vpop.f32.mrb[37].mxu1 }
 0x3b6   :  { %v1124_v29 = vadd.f32 %v3354_v16, %v1123_v28  ;;  %v2531_v30 = vpop.f32.mrb[38].mxu1 }
 0x3b7   :  { %2903 = vtanh.f32 %v1132_v26  ;;  %v1135_v31 = vadd.f32 %v2531_v30, %v3354_v16  ;;  %v1126_v32 = vpop.f32.mrb[39].mxu1 }
 0x3b8   :  { %2905 = vtanh.f32 %v1124_v29  ;;  %v1127_v33 = vadd.f32 %v3354_v16, %v1126_v32 }
 0x3b9   :  { %v2896_v35 = vpop.eup %2895  ;;  %2907 = vtanh.f32 %v1135_v31 }
 0x3ba   :  { %v2898_v36 = vpop.eup %2897  ;;  %2909 = vtanh.f32 %v1127_v33 }
 0x3bb   :  { %v2900_v37 = vpop.eup %2899 }
 0x3bc   :  { %v2902_v38 = vpop.eup %2901  ;;  %v2534_v39 = vpop.f32.mrb[40].mxu1  ;;  %v1267_v40 = vpack.c.bf16 %v2900_v37, %v2896_v35 }
 0x3bd   :  { %v1148_v41 = vadd.f32 %v2534_v39, %v3354_v16  ;;  %v1139_v42 = vpop.f32.mrb[41].mxu1  ;;  %v1266_v43 = vpack.c.bf16 %v2902_v38, %v2898_v36 }
 0x3be   :  { %v1140_v44 = vadd.f32 %v3354_v16, %v1139_v42  ;;  %v2535_v45 = vpop.f32.mrb[42].mxu1 }
 0x3bf   :  { %2911 = vtanh.f32 %v1148_v41  ;;  %v1151_v46 = vadd.f32 %v2535_v45, %v3354_v16  ;;  %v1142_v47 = vpop.f32.mrb[43].mxu1  ;;  %2572 = vmatprep.mubr.bf16.mxu0 %v1266_v43 }
 0x3c0   :  { %2913 = vtanh.f32 %v1140_v44  ;;  %v1143_v48 = vadd.f32 %v3354_v16, %v1142_v47  ;;  %2573 = vmatmul.mubr.bf16.vlgmr.msra.gmra.mrb[64].mxu0 %v1267_v40 }
 0x3c1   :  { %v2904_v49 = vpop.eup %2903  ;;  %2915 = vtanh.f32 %v1151_v46  ;;  %1670 = vmatpush1.bf16.msra.mxu0 %v2679_v10 }
 0x3c2   :  { %v2906_v50 = vpop.eup %2905  ;;  %2917 = vtanh.f32 %v1143_v48  ;;  %1671 = vmatprep.subr.bf16.mxu0 %v2684_v11 }
 0x3c3   :  { %v2908_v51 = vpop.eup %2907 }
 0x3c4   :  { %v2910_v52 = vpop.eup %2909  ;;  %v2538_v53 = vpop.f32.mrb[44].mxu1  ;;  %v1269_v54 = vpack.c.bf16 %v2908_v51, %v2904_v49 }
 0x3c5   :  { %v1164_v55 = vadd.f32 %v2538_v53, %v3354_v16  ;;  %v1155_v56 = vpop.f32.mrb[45].mxu1  ;;  %v1268_v57 = vpack.c.bf16 %v2910_v52, %v2906_v50  ;;  %1672 = vmatpush1.bf16.msra.mxu0 %v3324_v12 }
 0x3c6   :  { %v1156_v58 = vadd.f32 %v3354_v16, %v1155_v56  ;;  %v2539_v59 = vpop.f32.mrb[46].mxu1  ;;  %1673 = vmatprep.subr.bf16.mxu0 %v3329_v13 }
 0x3c7   :  { %2919 = vtanh.f32 %v1164_v55  ;;  %v1167_v60 = vadd.f32 %v2539_v59, %v3354_v16  ;;  %v1158_v61 = vpop.f32.mrb[47].mxu1  ;;  %2576 = vmatprep.mubr.bf16.mxu0 %v1268_v57 }
 0x3c8   :  { %2921 = vtanh.f32 %v1156_v58  ;;  %v1159_v62 = vadd.f32 %v3354_v16, %v1158_v61  ;;  %2577 = vmatmul.mubr.bf16.gmra.mrb[68].mxu0 %v1269_v54 }
 0x3c9   :  { %v2912_v63 = vpop.eup %2911  ;;  %2923 = vtanh.f32 %v1167_v60  ;;  %1674 = vmatpush1.bf16.msra.mxu0 %v3336_v14 }
 0x3ca   :  { %v2914_v0 = vpop.eup %2913  ;;  %2925 = vtanh.f32 %v1159_v62  ;;  %1675 = vmatprep.subr.bf16.mxu0 %v3341_v27 }
 0x3cb   :  { %v2916_v1 = vpop.eup %2915 }
 0x3cc   :  { %v2918_v2 = vpop.eup %2917  ;;  %v2542_v3 = vpop.f32.mrb[48].mxu1  ;;  %v1271_v4 = vpack.c.bf16 %v2916_v1, %v2912_v63 }
 0x3cd   :  { %v1180_v5 = vadd.f32 %v2542_v3, %v3354_v16  ;;  %v1171_v6 = vpop.f32.mrb[49].mxu1  ;;  %v1270_v7 = vpack.c.bf16 %v2918_v2, %v2914_v0  ;;  %1676 = vmatpush1.bf16.msra.mxu0 %v3348_v15 }
 0x3ce   :  { %v1172_v8 = vadd.f32 %v3354_v16, %v1171_v6  ;;  %v2543_v34 = vpop.f32.mrb[50].mxu1  ;;  %v2694_v6 = vld [vmem:[%s3556_s3 + $0x50] ss:$8 sps:$4 sm:$0xff]  }
 0x3cf   :  { %2927 = vtanh.f32 %v1180_v5  ;;  %v1183_v9 = vadd.f32 %v2543_v34, %v3354_v16  ;;  %v1174_v10 = vpop.f32.mrb[51].mxu1  ;;  %2580 = vmatprep.mubr.bf16.mxu0 %v1270_v7  ;;  %v2696_v5 = vld [vmem:[%s3556_s3 + $0x54] ss:$8 sps:$4 sm:$0xff]   ;;  %v2699_v7 = vld [vmem:[%s3556_s3 + $0x64] ss:$8 sps:$4 sm:$0xff]  }
 0x3d0   :  { %2929 = vtanh.f32 %v1172_v8  ;;  %v1175_v11 = vadd.f32 %v3354_v16, %v1174_v10  ;;  %2581 = vmatmul.mubr.bf16.gmra.mrb[72].mxu0 %v1271_v4  ;;  %v2691_v4 = vld [vmem:[%s3556_s3 + $0x40] ss:$8 sps:$4 sm:$0xff]   ;;  %v2702_v34 = vld [vmem:[%s3556_s3 + $0x74] ss:$8 sps:$4 sm:$0xff]   ;;  %v3074_v10 = vmov 0  }
 0x3d1   :  { %v2920_v12 = vpop.eup %2919  ;;  %2931 = vtanh.f32 %v1183_v9  ;;  %v2697_v8 = vld [vmem:[%s3556_s3 + $0x60] ss:$8 sps:$4 sm:$0xff]   ;;  %v2700_v9 = vld [vmem:[%s3556_s3 + $0x70] ss:$8 sps:$4 sm:$0xff]   ;;  %1751 = vmatprep.mubr.bf16.mxu1 %v3074_v10 }
 0x3d2   :  { %v2922_v13 = vpop.eup %2921  ;;  %2933 = vtanh.f32 %v1175_v11  ;;  %v3422_v11 = vld [vmem:[%s3557_s4 + $0x4] ss:$0 sm:$0xff] }
 0x3d3   :  { %v2924_v14 = vpop.eup %2923 }
 0x3d4   :  { %v2926_v27 = vpop.eup %2925  ;;  %v2546_v17 = vpop.f32.mrb[52].mxu1  ;;  %v1273_v15 = vpack.c.bf16 %v2924_v14, %v2920_v12 }
 0x3d5   :  { %v1196_v18 = vadd.f32 %v2546_v17, %v3354_v16  ;;  %v1187_v19 = vpop.f32.mrb[53].mxu1  ;;  %v1272_v20 = vpack.c.bf16 %v2926_v27, %v2922_v13 }
 0x3d6   :  { %v1188_v21 = vadd.f32 %v3354_v16, %v1187_v19  ;;  %v2547_v22 = vpop.f32.mrb[54].mxu1 }
 0x3d7   :  { %2935 = vtanh.f32 %v1196_v18  ;;  %v1199_v23 = vadd.f32 %v2547_v22, %v3354_v16  ;;  %v1190_v24 = vpop.f32.mrb[55].mxu1  ;;  %2584 = vmatprep.mubr.bf16.mxu0 %v1272_v20 }
 0x3d8   :  { %2937 = vtanh.f32 %v1188_v21  ;;  %v1191_v25 = vadd.f32 %v3354_v16, %v1190_v24  ;;  %2585 = vmatmul.mubr.bf16.gmra.mrb[76].mxu0 %v1273_v15 }
 0x3d9   :  { %v2928_v26 = vpop.eup %2927  ;;  %2939 = vtanh.f32 %v1199_v23 }
 0x3da   :  { %v2930_v28 = vpop.eup %2929  ;;  %2941 = vtanh.f32 %v1191_v25 }
 0x3db   :  { %v2932_v29 = vpop.eup %2931 }
 0x3dc   :  { %v2934_v30 = vpop.eup %2933  ;;  %v1275_v31 = vpack.c.bf16 %v2932_v29, %v2928_v26  ;;  %v2550_v32 = vpop.f32.mrb[56].mxu1 }
 0x3dd   :  { %v1274_v33 = vpack.c.bf16 %v2934_v30, %v2930_v28  ;;  %v1212_v35 = vadd.f32 %v2550_v32, %v3354_v16  ;;  %v1203_v36 = vpop.f32.mrb[57].mxu1 }
 0x3de   :  { %v1204_v37 = vadd.f32 %v3354_v16, %v1203_v36  ;;  %v2551_v38 = vpop.f32.mrb[58].mxu1 }
 0x3df   :  { %2588 = vmatprep.mubr.bf16.mxu0 %v1274_v33  ;;  %2943 = vtanh.f32 %v1212_v35  ;;  %v1215_v39 = vadd.f32 %v2551_v38, %v3354_v16  ;;  %v1206_v40 = vpop.f32.mrb[59].mxu1 }
 0x3e0   :  { %2589 = vmatmul.mubr.bf16.gmra.mrb[80].mxu0 %v1275_v31  ;;  %2945 = vtanh.f32 %v1204_v37  ;;  %v1207_v41 = vadd.f32 %v3354_v16, %v1206_v40 }
 0x3e1   :  { %v2936_v42 = vpop.eup %2935  ;;  %2947 = vtanh.f32 %v1215_v39 }
 0x3e2   :  { %v2938_v43 = vpop.eup %2937  ;;  %2949 = vtanh.f32 %v1207_v41 }
 0x3e3   :  { %v2940_v44 = vpop.eup %2939 }
 0x3e4   :  { %v2942_v45 = vpop.eup %2941  ;;  %v1277_v46 = vpack.c.bf16 %v2940_v44, %v2936_v42  ;;  %v2554_v47 = vpop.f32.mrb[60].mxu1 }
 0x3e5   :  { %v1276_v48 = vpack.c.bf16 %v2942_v45, %v2938_v43  ;;  %v1228_v49 = vadd.f32 %v2554_v47, %v3354_v16  ;;  %v1219_v50 = vpop.f32.mrb[61].mxu1 }
 0x3e6   :  { %v1220_v51 = vadd.f32 %v3354_v16, %v1219_v50  ;;  %v2555_v52 = vpop.f32.mrb[62].mxu1 }
 0x3e7   :  { %2592 = vmatprep.mubr.bf16.mxu0 %v1276_v48  ;;  %2951 = vtanh.f32 %v1228_v49  ;;  %v1231_v53 = vadd.f32 %v2555_v52, %v3354_v16  ;;  %v1222_v54 = vpop.f32.mrb[63].mxu1 }
 0x3e8   :  { %2593 = vmatmul.mubr.bf16.gmra.mrb[84].mxu0 %v1277_v46  ;;  %2953 = vtanh.f32 %v1220_v51  ;;  %v1223_v55 = vadd.f32 %v3354_v16, %v1222_v54  ;;  %v2693_v16 = vld [vmem:[%s3556_s3 + $0x44] ss:$8 sps:$4 sm:$0xff]  }
 0x3e9   :  { %v2944_v56 = vpop.eup %2943  ;;  %2955 = vtanh.f32 %v1231_v53  ;;  %2608 = vmatprep.subr.bf16.mxu1 %v2693_v16  ;;  %1677 = vmatprep.subr.bf16.mxu0 %v2693_v16 }
 0x3ea   :  { %v2946_v57 = vpop.eup %2945  ;;  %2957 = vtanh.f32 %v1223_v55  ;;  %2616 = vmatpush1.bf16.msra.mxu1 %v2691_v4  ;;  %1678 = vmatpush1.bf16.msra.mxu0 %v2691_v4 }
 0x3eb   :  { %v2948_v58 = vpop.eup %2947  ;;  %1679 = vmatprep.subr.bf16.mxu0 %v2696_v5  ;;  %2609 = vmatprep.subr.bf16.mxu1 %v2696_v5 }
 0x3ec   :  { %v2950_v59 = vpop.eup %2949  ;;  %v1279_v60 = vpack.c.bf16 %v2948_v58, %v2944_v56 }
 0x3ed   :  { %v1278_v61 = vpack.c.bf16 %v2950_v59, %v2946_v57 }
 0x3ee   :  { %1680 = vmatpush1.bf16.msra.mxu0 %v2694_v6  ;;  %2617 = vmatpush1.bf16.msra.mxu1 %v2694_v6 }
 0x3ef   :  { %2596 = vmatprep.mubr.bf16.mxu0 %v1278_v61  ;;  %1681 = vmatprep.subr.bf16.mxu0 %v2699_v7 }
 0x3f0   :  { %2597 = vmatmul.mubr.bf16.gmra.mrb[88].mxu0 %v1279_v60  ;;  %2610 = vmatprep.subr.bf16.mxu1 %v2699_v7 }
 0x3f1   :  { %v2952_v62 = vpop.eup %2951 }
 0x3f2   :  { %v2954_v63 = vpop.eup %2953  ;;  %1682 = vmatpush1.bf16.msra.mxu0 %v2697_v8  ;;  %2618 = vmatpush1.bf16.msra.mxu1 %v2697_v8 }
 0x3f3   :  { %v2956_v0 = vpop.eup %2955  ;;  %1683 = vmatprep.subr.bf16.mxu0 %v2702_v34  ;;  %2611 = vmatprep.subr.bf16.mxu1 %v2702_v34 }
 0x3f4   :  { %v2958_v1 = vpop.eup %2957  ;;  %v1281_v2 = vpack.c.bf16 %v2956_v0, %v2952_v62 }
 0x3f5   :  { %v1280_v3 = vpack.c.bf16 %v2958_v1, %v2954_v63 }
 0x3f6   :  { %1684 = vmatpush1.bf16.msra.mxu0 %v2700_v9  ;;  %2619 = vmatpush1.bf16.msra.mxu1 %v2700_v9 }
 0x3f7   :  { %2600 = vmatprep.mubr.bf16.mxu0 %v1280_v3 }
 0x3f8   :  { %2601 = vmatmul.mubr.bf16.gmra.mrb[92].mxu0 %v1281_v2 }
 0x3f9   :  { %1701 = vmatprep.mubr.bf16.mxu0 %v3074_v10 }
 0x493   :  { %v2574_v12 = vpop.f32.mrb[64].mxu0 }
 0x494   :  { %v1395_v13 = vadd.f32 %v2574_v12, %v3422_v11  ;;  %v1386_v14 = vpop.f32.mrb[65].mxu0 }
 0x495   :  { %v1387_v27 = vadd.f32 %v3422_v11, %v1386_v14  ;;  %v2575_v17 = vpop.f32.mrb[66].mxu0 }
 0x496   :  { %2959 = vtanh.f32 %v1395_v13  ;;  %v1398_v15 = vadd.f32 %v2575_v17, %v3422_v11  ;;  %v1389_v18 = vpop.f32.mrb[67].mxu0 }
 0x497   :  { %2961 = vtanh.f32 %v1387_v27  ;;  %v1390_v19 = vadd.f32 %v3422_v11, %v1389_v18 }
 0x498   :  { %2963 = vtanh.f32 %v1398_v15 }
 0x499   :  { %2965 = vtanh.f32 %v1390_v19 }
 0x49b   :  { %v2578_v20 = vpop.f32.mrb[68].mxu0 }
 0x49c   :  { %v1411_v21 = vadd.f32 %v2578_v20, %v3422_v11  ;;  %v1402_v22 = vpop.f32.mrb[69].mxu0 }
 0x49d   :  { %v1403_v23 = vadd.f32 %v3422_v11, %v1402_v22  ;;  %v2579_v24 = vpop.f32.mrb[70].mxu0 }
 0x49e   :  { %2967 = vtanh.f32 %v1411_v21  ;;  %v1414_v25 = vadd.f32 %v2579_v24, %v3422_v11  ;;  %v1405_v26 = vpop.f32.mrb[71].mxu0 }
 0x49f   :  { %2969 = vtanh.f32 %v1403_v23  ;;  %v1406_v28 = vadd.f32 %v3422_v11, %v1405_v26 }
 0x4a0   :  { %v2960_v29 = vpop.eup %2959  ;;  %2971 = vtanh.f32 %v1414_v25 }
 0x4a1   :  { %v2962_v30 = vpop.eup %2961  ;;  %2973 = vtanh.f32 %v1406_v28 }
 0x4a2   :  { %v2964_v31 = vpop.eup %2963 }
 0x4a3   :  { %v2966_v32 = vpop.eup %2965  ;;  %v2582_v33 = vpop.f32.mrb[72].mxu0  ;;  %v1546_v35 = vpack.c.bf16 %v2964_v31, %v2960_v29 }
 0x4a4   :  { %v1427_v36 = vadd.f32 %v2582_v33, %v3422_v11  ;;  %v1418_v37 = vpop.f32.mrb[73].mxu0  ;;  %v1545_v38 = vpack.c.bf16 %v2966_v32, %v2962_v30 }
 0x4a5   :  { %v1419_v39 = vadd.f32 %v3422_v11, %v1418_v37  ;;  %v2583_v40 = vpop.f32.mrb[74].mxu0 }
 0x4a6   :  { %2975 = vtanh.f32 %v1427_v36  ;;  %v1430_v41 = vadd.f32 %v2583_v40, %v3422_v11  ;;  %v1421_v42 = vpop.f32.mrb[75].mxu0  ;;  %1702 = vmatmul.mubr.bf16.vlgmr.msra.gmra.mrb[96].mxu0 %v1545_v38 }
 0x4a7   :  { %2977 = vtanh.f32 %v1419_v39  ;;  %v1422_v43 = vadd.f32 %v3422_v11, %v1421_v42  ;;  %1711 = vmatprep.mubr.bf16.mxu0 %v3074_v10 }
 0x4a8   :  { %v2968_v44 = vpop.eup %2967  ;;  %2979 = vtanh.f32 %v1430_v41 }
 0x4a9   :  { %v2970_v45 = vpop.eup %2969  ;;  %2981 = vtanh.f32 %v1422_v43 }
 0x4aa   :  { %v2972_v46 = vpop.eup %2971 }
 0x4ab   :  { %v2974_v47 = vpop.eup %2973  ;;  %v2586_v48 = vpop.f32.mrb[76].mxu0  ;;  %v1548_v49 = vpack.c.bf16 %v2972_v46, %v2968_v44 }
 0x4ac   :  { %v1443_v50 = vadd.f32 %v2586_v48, %v3422_v11  ;;  %v1434_v51 = vpop.f32.mrb[77].mxu0  ;;  %v1547_v52 = vpack.c.bf16 %v2974_v47, %v2970_v45 }
 0x4ad   :  { %v1435_v53 = vadd.f32 %v3422_v11, %v1434_v51  ;;  %v2587_v54 = vpop.f32.mrb[78].mxu0 }
 0x4ae   :  { %2983 = vtanh.f32 %v1443_v50  ;;  %v1446_v55 = vadd.f32 %v2587_v54, %v3422_v11  ;;  %v1437_v56 = vpop.f32.mrb[79].mxu0  ;;  %1712 = vmatmul.mubr.bf16.gmra.mrb[100].mxu0 %v1546_v35 }
 0x4af   :  { %2985 = vtanh.f32 %v1435_v53  ;;  %v1438_v57 = vadd.f32 %v3422_v11, %v1437_v56  ;;  %1721 = vmatprep.mubr.bf16.mxu0 %v3074_v10 }
 0x4b0   :  { %v2976_v58 = vpop.eup %2975  ;;  %2987 = vtanh.f32 %v1446_v55 }
 0x4b1   :  { %v2978_v59 = vpop.eup %2977  ;;  %2989 = vtanh.f32 %v1438_v57 }
 0x4b2   :  { %v2980_v60 = vpop.eup %2979 }
 0x4b3   :  { %v2982_v61 = vpop.eup %2981  ;;  %v2590_v62 = vpop.f32.mrb[80].mxu0  ;;  %v1550_v63 = vpack.c.bf16 %v2980_v60, %v2976_v58 }
 0x4b4   :  { %v1459_v0 = vadd.f32 %v2590_v62, %v3422_v11  ;;  %v1450_v1 = vpop.f32.mrb[81].mxu0  ;;  %v1549_v2 = vpack.c.bf16 %v2982_v61, %v2978_v59 }
 0x4b5   :  { %v1451_v3 = vadd.f32 %v3422_v11, %v1450_v1  ;;  %v2591_v16 = vpop.f32.mrb[82].mxu0  ;;  %1752 = vmatmul.mubr.bf16.vlgmr.msra.gmra.mrb[64].mxu1 %v1550_v63 }
 0x4b6   :  { %2991 = vtanh.f32 %v1459_v0  ;;  %v1462_v4 = vadd.f32 %v2591_v16, %v3422_v11  ;;  %v1453_v5 = vpop.f32.mrb[83].mxu0  ;;  %1722 = vmatmul.mubr.bf16.gmra.mrb[104].mxu0 %v1547_v52  ;;  %1761 = vmatprep.mubr.bf16.mxu1 %v3074_v10 }
 0x4b7   :  { %2993 = vtanh.f32 %v1451_v3  ;;  %v1454_v6 = vadd.f32 %v3422_v11, %v1453_v5  ;;  %1731 = vmatprep.mubr.bf16.mxu0 %v3074_v10 }
 0x4b8   :  { %v2984_v7 = vpop.eup %2983  ;;  %2995 = vtanh.f32 %v1462_v4 }
 0x4b9   :  { %v2986_v8 = vpop.eup %2985  ;;  %2997 = vtanh.f32 %v1454_v6 }
 0x4ba   :  { %v2988_v34 = vpop.eup %2987 }
 0x4bb   :  { %v2990_v9 = vpop.eup %2989  ;;  %v2594_v12 = vpop.f32.mrb[84].mxu0  ;;  %v1552_v13 = vpack.c.bf16 %v2988_v34, %v2984_v7 }
 0x4bc   :  { %v1475_v14 = vadd.f32 %v2594_v12, %v3422_v11  ;;  %v1466_v27 = vpop.f32.mrb[85].mxu0  ;;  %v1551_v17 = vpack.c.bf16 %v2990_v9, %v2986_v8 }
 0x4bd   :  { %v1467_v15 = vadd.f32 %v3422_v11, %v1466_v27  ;;  %v2595_v18 = vpop.f32.mrb[86].mxu0 }
 0x4be   :  { %2999 = vtanh.f32 %v1475_v14  ;;  %v1478_v19 = vadd.f32 %v2595_v18, %v3422_v11  ;;  %v1469_v20 = vpop.f32.mrb[87].mxu0  ;;  %1732 = vmatmul.mubr.bf16.gmra.mrb[108].mxu0 %v1548_v49  ;;  %1762 = vmatmul.mubr.bf16.gmra.mrb[68].mxu1 %v1551_v17 }
 0x4bf   :  { %3001 = vtanh.f32 %v1467_v15  ;;  %v1470_v21 = vadd.f32 %v3422_v11, %v1469_v20  ;;  %1741 = vmatprep.mubr.bf16.mxu0 %v3074_v10  ;;  %1771 = vmatprep.mubr.bf16.mxu1 %v3074_v10 }
 0x4c0   :  { %v2992_v22 = vpop.eup %2991  ;;  %3003 = vtanh.f32 %v1478_v19 }
 0x4c1   :  { %v2994_v23 = vpop.eup %2993  ;;  %3005 = vtanh.f32 %v1470_v21 }
 0x4c2   :  { %v2996_v24 = vpop.eup %2995 }
 0x4c3   :  { %v2998_v25 = vpop.eup %2997  ;;  %v2598_v26 = vpop.f32.mrb[88].mxu0  ;;  %v1554_v28 = vpack.c.bf16 %v2996_v24, %v2992_v22 }
 0x4c4   :  { %v1491_v29 = vadd.f32 %v2598_v26, %v3422_v11  ;;  %v1482_v30 = vpop.f32.mrb[89].mxu0  ;;  %v1553_v31 = vpack.c.bf16 %v2998_v25, %v2994_v23 }
 0x4c5   :  { %v1483_v32 = vadd.f32 %v3422_v11, %v1482_v30  ;;  %v2599_v33 = vpop.f32.mrb[90].mxu0 }
 0x4c6   :  { %1742 = vmatmul.mubr.bf16.gmra.mrb[112].mxu0 %v1549_v2  ;;  %1772 = vmatmul.mubr.bf16.gmra.mrb[72].mxu1 %v1552_v13  ;;  %3007 = vtanh.f32 %v1491_v29  ;;  %v1494_v35 = vadd.f32 %v2599_v33, %v3422_v11  ;;  %v1485_v36 = vpop.f32.mrb[91].mxu0  ;;  %v1577_v2 = vld [vmem:[%s3558_s5] sm:$0x3]  ;;  %s3075_s5 = smov [#allocation5]  }
 0x4c7   :  { %3009 = vtanh.f32 %v1483_v32  ;;  %v1486_v37 = vadd.f32 %v3422_v11, %v1485_v36  ;;  %1781 = vmatprep.mubr.bf16.mxu1 %v3074_v10  ;;  %s2091_s13 = sshll.u32 %s3075_s5, 4  ;;  %s2092_s13 = int_to_ptr.vmem [resolvable:$true] %s2091_s13 }
 0x4c8   :  { %v3000_v38 = vpop.eup %2999  ;;  %3011 = vtanh.f32 %v1494_v35  ;;  %s3045_s14 = scalar_lea.vmem %s2092_s13, 4096  ;;  %p3050_p9 = scmp.lt.s32.totalorder %s2092_s13, %s2092_s13 }
 0x4c9   :  { %v3002_v39 = vpop.eup %3001  ;;  %3013 = vtanh.f32 %v1486_v37  ;;  %p3046_p8 = scmp.ne.s32.totalorder %s2092_s13, %s3045_s14  ;;  %p3051_p10 = scmp.lt.s32.totalorder %s3045_s14, %s3045_s14 }
 0x4ca   :  { %v3004_v40 = vpop.eup %3003 }
 0x4cb   :  { %v3006_v41 = vpop.eup %3005  ;;  %v2602_v42 = vpop.f32.mrb[92].mxu0  ;;  %v1556_v43 = vpack.c.bf16 %v3004_v40, %v3000_v38  ;;  %p3052_p11 = por %p3051_p10, %p3050_p9 }
 0x4cc   :  { %v1507_v44 = vadd.f32 %v2602_v42, %v3422_v11  ;;  %v1498_v45 = vpop.f32.mrb[93].mxu0  ;;  %v1555_v46 = vpack.c.bf16 %v3006_v41, %v3002_v39 }
 0x4cd   :  { %v1499_v47 = vadd.f32 %v3422_v11, %v1498_v45  ;;  %v2603_v48 = vpop.f32.mrb[94].mxu0  ;;  %p3053_p12 = pnand %p3052_p11, %p3046_p8 }
 0x4ce   :  { %1782 = vmatmul.mubr.bf16.gmra.mrb[76].mxu1 %v1553_v31  ;;  %3015 = vtanh.f32 %v1507_v44  ;;  %v1510_v49 = vadd.f32 %v2603_v48, %v3422_v11  ;;  %v1501_v50 = vpop.f32.mrb[95].mxu0 }
 0x4cf   :  { %1791 = vmatprep.mubr.bf16.mxu1 %v3074_v10  ;;  %3017 = vtanh.f32 %v1499_v47  ;;  %v1502_v51 = vadd.f32 %v3422_v11, %v1501_v50  ;;  %v1579_v11 = vlaneseq }
 0x4d0   :  { %v3008_v52 = vpop.eup %3007  ;;  %3019 = vtanh.f32 %v1510_v49 }
 0x4d1   :  { %v3010_v53 = vpop.eup %3009  ;;  %3021 = vtanh.f32 %v1502_v51  ;;  %v1580_v0 = vshrl.u32 %v1579_v11, 7 }
 0x4d2   :  { %v3012_v54 = vpop.eup %3011 }
 0x4d3   :  { %v3014_v55 = vpop.eup %3013  ;;  %v1558_v56 = vpack.c.bf16 %v3012_v54, %v3008_v52  ;;  %v1581_v1 = vsub.s32 0, %v1580_v0  ;;  %v1585_v3 = vsub.s32 1, %v1580_v0 }
 0x4d4   :  { %v1557_v57 = vpack.c.bf16 %v3014_v55, %v3010_v53 }
 0x4d5   :  { %v3473_v16 = vrot.slane %v1577_v2, %v1581_v1  ;;  %v3475_v4 = vrot.slane %v1577_v2, %v1585_v3 }
 0x4d6   :  { %1792 = vmatmul.mubr.bf16.gmra.mrb[80].mxu1 %v1554_v28 }
 0x4d7   :  { %1801 = vmatprep.mubr.bf16.mxu1 %v3074_v10 }
 0x4d8   :  { %v3016_v58 = vpop.eup %3015 }
 0x4d9   :  { %v3018_v59 = vpop.eup %3017 }
 0x4da   :  { %v3020_v60 = vpop.eup %3019 }
 0x4db   :  { %v3022_v61 = vpop.eup %3021  ;;  %v1560_v62 = vpack.c.bf16 %v3020_v60, %v3016_v58 }
 0x4dc   :  { %v1559_v63 = vpack.c.bf16 %v3022_v61, %v3018_v59 }
 0x4de   :  { %1802 = vmatmul.mubr.bf16.gmra.mrb[84].mxu1 %v1555_v46 }
 0x4df   :  { %1811 = vmatprep.mubr.bf16.mxu1 %v3074_v10 }
 0x4e6   :  { %1812 = vmatmul.mubr.bf16.gmra.mrb[88].mxu1 %v1556_v43 }
 0x4e7   :  { %1821 = vmatprep.mubr.bf16.mxu1 %v3074_v10 }
 0x4ee   :  { %1822 = vmatmul.mubr.bf16.gmra.mrb[92].mxu1 %v1557_v57 }
 0x4ef   :  { %1831 = vmatprep.mubr.bf16.mxu1 %v3074_v10 }
 0x4f6   :  { %1832 = vmatmul.mubr.bf16.gmra.mrb[96].mxu1 %v1558_v56 }
 0x4f7   :  { %1841 = vmatprep.mubr.bf16.mxu1 %v3074_v10 }
 0x4fe   :  { %1842 = vmatmul.mubr.bf16.gmra.mrb[100].mxu1 %v1559_v63 }
 0x4ff   :  { %1851 = vmatprep.mubr.bf16.mxu1 %v3074_v10 }
 0x506   :  { %1852 = vmatmul.mubr.bf16.gmra.mrb[104].mxu1 %v1560_v62 }
 0x579   :  { %v1703_v5 = vpop.f32.mrb[96].mxu0 }
 0x57a   :  { %v1704_v6 = vadd.f32 %v1703_v5, %v3473_v16  ;;  %v1705_v7 = vpop.f32.mrb[97].mxu0 }
 0x57b   :  { %v1706_v8 = vadd.f32 %v1705_v7, %v3475_v4  ;;  %v1707_v10 = vpop.f32.mrb[98].mxu0 }
 0x57c   :  { %v1708_v34 = vadd.f32 %v1707_v10, %v3473_v16  ;;  %v1709_v9 = vpop.f32.mrb[99].mxu0 }
 0x57d   :  { %v2224_v12 = vpack.c.bf16 %v1706_v8, %v1704_v6  ;;  %v1710_v13 = vadd.f32 %v1709_v9, %v3475_v4 }
 0x57f   :  { %2054 = vst [vmem:[#allocation5] sm:$0xff] %v2224_v12  ;;  %v2225_v14 = vpack.c.bf16 %v1710_v13, %v1708_v34 }
 0x581   :  { %2055 = vst [vmem:[#allocation5 + $0x8] sm:$0xff] %v2225_v14  ;;  %v1713_v27 = vpop.f32.mrb[100].mxu0 }
 0x582   :  { %v1714_v17 = vadd.f32 %v1713_v27, %v3473_v16  ;;  %v1715_v15 = vpop.f32.mrb[101].mxu0 }
 0x583   :  { %v1716_v18 = vadd.f32 %v1715_v15, %v3475_v4  ;;  %v1717_v19 = vpop.f32.mrb[102].mxu0 }
 0x584   :  { %v1718_v20 = vadd.f32 %v1717_v19, %v3473_v16  ;;  %v1719_v21 = vpop.f32.mrb[103].mxu0 }
 0x585   :  { %v2226_v22 = vpack.c.bf16 %v1716_v18, %v1714_v17  ;;  %v1720_v23 = vadd.f32 %v1719_v21, %v3475_v4 }
 0x587   :  { %2056 = vst [vmem:[#allocation5 + $0x10] sm:$0xff] %v2226_v22  ;;  %v2227_v24 = vpack.c.bf16 %v1720_v23, %v1718_v20 }
 0x588   :  { %v1753_v25 = vpop.f32.mrb[64].mxu1 }
 0x589   :  { %2057 = vst [vmem:[#allocation5 + $0x18] sm:$0xff] %v2227_v24  ;;  %v1754_v26 = vadd.f32 %v1753_v25, %v3473_v16  ;;  %v1723_v28 = vpop.f32.mrb[104].mxu0  ;;  %v1755_v29 = vpop.f32.mrb[65].mxu1 }
 0x58a   :  { %v1724_v30 = vadd.f32 %v1723_v28, %v3473_v16  ;;  %v1756_v31 = vadd.f32 %v1755_v29, %v3475_v4  ;;  %v1725_v32 = vpop.f32.mrb[105].mxu0  ;;  %v1757_v33 = vpop.f32.mrb[66].mxu1 }
 0x58b   :  { %v1726_v35 = vadd.f32 %v1725_v32, %v3475_v4  ;;  %v1758_v36 = vadd.f32 %v1757_v33, %v3473_v16  ;;  %v1727_v37 = vpop.f32.mrb[106].mxu0  ;;  %v1759_v38 = vpop.f32.mrb[67].mxu1 }
 0x58c   :  { %v2234_v39 = vpack.c.bf16 %v1756_v31, %v1754_v26  ;;  %v1728_v40 = vadd.f32 %v1727_v37, %v3473_v16  ;;  %v1760_v41 = vadd.f32 %v1759_v38, %v3475_v4  ;;  %v1729_v42 = vpop.f32.mrb[107].mxu0 }
 0x58d   :  { %v2228_v43 = vpack.c.bf16 %v1726_v35, %v1724_v30  ;;  %v1730_v44 = vadd.f32 %v1729_v42, %v3475_v4 }
 0x58e   :  { %2064 = vst [vmem:[#allocation5 + $0x50] sm:$0xff] %v2234_v39  ;;  %v2235_v45 = vpack.c.bf16 %v1760_v41, %v1758_v36 }
 0x58f   :  { %2058 = vst [vmem:[#allocation5 + $0x20] sm:$0xff] %v2228_v43  ;;  %v2229_v46 = vpack.c.bf16 %v1730_v44, %v1728_v40 }
 0x590   :  { %2065 = vst [vmem:[#allocation5 + $0x58] sm:$0xff] %v2235_v45 }
 0x591   :  { %2059 = vst [vmem:[#allocation5 + $0x28] sm:$0xff] %v2229_v46  ;;  %v1733_v47 = vpop.f32.mrb[108].mxu0  ;;  %v1763_v48 = vpop.f32.mrb[68].mxu1 }
 0x592   :  { %v1734_v49 = vadd.f32 %v1733_v47, %v3473_v16  ;;  %v1764_v50 = vadd.f32 %v1763_v48, %v3473_v16  ;;  %v1735_v51 = vpop.f32.mrb[109].mxu0  ;;  %v1765_v52 = vpop.f32.mrb[69].mxu1 }
 0x593   :  { %v1736_v53 = vadd.f32 %v1735_v51, %v3475_v4  ;;  %v1766_v54 = vadd.f32 %v1765_v52, %v3475_v4  ;;  %v1737_v55 = vpop.f32.mrb[110].mxu0  ;;  %v1767_v56 = vpop.f32.mrb[70].mxu1 }
 0x594   :  { %v1738_v57 = vadd.f32 %v1737_v55, %v3473_v16  ;;  %v1768_v58 = vadd.f32 %v1767_v56, %v3473_v16  ;;  %v1739_v59 = vpop.f32.mrb[111].mxu0  ;;  %v1769_v60 = vpop.f32.mrb[71].mxu1 }
 0x595   :  { %v2230_v61 = vpack.c.bf16 %v1736_v53, %v1734_v49  ;;  %v2236_v62 = vpack.c.bf16 %v1766_v54, %v1764_v50  ;;  %v1740_v63 = vadd.f32 %v1739_v59, %v3475_v4  ;;  %v1770_v11 = vadd.f32 %v1769_v60, %v3475_v4 }
 0x597   :  { %2060 = vst [vmem:[#allocation5 + $0x30] sm:$0xff] %v2230_v61  ;;  %2066 = vst [vmem:[#allocation5 + $0x60] sm:$0xff] %v2236_v62  ;;  %v2231_v0 = vpack.c.bf16 %v1740_v63, %v1738_v57  ;;  %v2237_v1 = vpack.c.bf16 %v1770_v11, %v1768_v58 }
 0x599   :  { %2061 = vst [vmem:[#allocation5 + $0x38] sm:$0xff] %v2231_v0  ;;  %2067 = vst [vmem:[#allocation5 + $0x68] sm:$0xff] %v2237_v1  ;;  %v1743_v2 = vpop.f32.mrb[112].mxu0  ;;  %v1773_v3 = vpop.f32.mrb[72].mxu1 }
 0x59a   :  { %v1744_v5 = vadd.f32 %v1743_v2, %v3473_v16  ;;  %v1774_v6 = vadd.f32 %v1773_v3, %v3473_v16  ;;  %v1745_v7 = vpop.f32.mrb[113].mxu0  ;;  %v1775_v8 = vpop.f32.mrb[73].mxu1 }
 0x59b   :  { %v1746_v10 = vadd.f32 %v1745_v7, %v3475_v4  ;;  %v1776_v34 = vadd.f32 %v1775_v8, %v3475_v4  ;;  %v1747_v9 = vpop.f32.mrb[114].mxu0  ;;  %v1777_v12 = vpop.f32.mrb[74].mxu1 }
 0x59c   :  { %v1748_v13 = vadd.f32 %v1747_v9, %v3473_v16  ;;  %v1778_v14 = vadd.f32 %v1777_v12, %v3473_v16  ;;  %v1749_v27 = vpop.f32.mrb[115].mxu0  ;;  %v1779_v17 = vpop.f32.mrb[75].mxu1 }
 0x59d   :  { %v2232_v15 = vpack.c.bf16 %v1746_v10, %v1744_v5  ;;  %v2238_v18 = vpack.c.bf16 %v1776_v34, %v1774_v6  ;;  %v1750_v19 = vadd.f32 %v1749_v27, %v3475_v4  ;;  %v1780_v20 = vadd.f32 %v1779_v17, %v3475_v4 }
 0x59f   :  { %2062 = vst [vmem:[#allocation5 + $0x40] sm:$0xff] %v2232_v15  ;;  %2068 = vst [vmem:[#allocation5 + $0x70] sm:$0xff] %v2238_v18  ;;  %v2233_v21 = vpack.c.bf16 %v1750_v19, %v1748_v13  ;;  %v2239_v22 = vpack.c.bf16 %v1780_v20, %v1778_v14 }
 0x5a1   :  { %2063 = vst [vmem:[#allocation5 + $0x48] sm:$0xff] %v2233_v21  ;;  %2069 = vst [vmem:[#allocation5 + $0x78] sm:$0xff] %v2239_v22  ;;  %v1783_v23 = vpop.f32.mrb[76].mxu1 }
 0x5a2   :  { %v1784_v24 = vadd.f32 %v1783_v23, %v3473_v16  ;;  %v1785_v25 = vpop.f32.mrb[77].mxu1 }
 0x5a3   :  { %v1786_v26 = vadd.f32 %v1785_v25, %v3475_v4  ;;  %v1787_v28 = vpop.f32.mrb[78].mxu1 }
 0x5a4   :  { %v1788_v29 = vadd.f32 %v1787_v28, %v3473_v16  ;;  %v1789_v30 = vpop.f32.mrb[79].mxu1 }
 0x5a5   :  { %v2240_v31 = vpack.c.bf16 %v1786_v26, %v1784_v24  ;;  %v1790_v32 = vadd.f32 %v1789_v30, %v3475_v4 }
 0x5a7   :  { %2070 = vst [vmem:[#allocation5 + $0x80] sm:$0xff] %v2240_v31  ;;  %v2241_v33 = vpack.c.bf16 %v1790_v32, %v1788_v29 }
 0x5a9   :  { %2071 = vst [vmem:[#allocation5 + $0x88] sm:$0xff] %v2241_v33  ;;  %v1793_v35 = vpop.f32.mrb[80].mxu1 }
 0x5aa   :  { %v1794_v36 = vadd.f32 %v1793_v35, %v3473_v16  ;;  %v1795_v37 = vpop.f32.mrb[81].mxu1 }
 0x5ab   :  { %v1796_v38 = vadd.f32 %v1795_v37, %v3475_v4  ;;  %v1797_v39 = vpop.f32.mrb[82].mxu1 }
 0x5ac   :  { %v1798_v40 = vadd.f32 %v1797_v39, %v3473_v16  ;;  %v1799_v41 = vpop.f32.mrb[83].mxu1 }
 0x5ad   :  { %v2242_v42 = vpack.c.bf16 %v1796_v38, %v1794_v36  ;;  %v1800_v43 = vadd.f32 %v1799_v41, %v3475_v4 }
 0x5af   :  { %2072 = vst [vmem:[#allocation5 + $0x90] sm:$0xff] %v2242_v42  ;;  %v2243_v44 = vpack.c.bf16 %v1800_v43, %v1798_v40 }
 0x5b1   :  { %2073 = vst [vmem:[#allocation5 + $0x98] sm:$0xff] %v2243_v44  ;;  %v1803_v45 = vpop.f32.mrb[84].mxu1 }
 0x5b2   :  { %v1804_v46 = vadd.f32 %v1803_v45, %v3473_v16  ;;  %v1805_v47 = vpop.f32.mrb[85].mxu1 }
 0x5b3   :  { %v1806_v48 = vadd.f32 %v1805_v47, %v3475_v4  ;;  %v1807_v49 = vpop.f32.mrb[86].mxu1 }
 0x5b4   :  { %v1808_v50 = vadd.f32 %v1807_v49, %v3473_v16  ;;  %v1809_v51 = vpop.f32.mrb[87].mxu1 }
 0x5b5   :  { %v2244_v52 = vpack.c.bf16 %v1806_v48, %v1804_v46  ;;  %v1810_v53 = vadd.f32 %v1809_v51, %v3475_v4 }
 0x5b7   :  { %2074 = vst [vmem:[#allocation5 + $0xa0] sm:$0xff] %v2244_v52  ;;  %v2245_v54 = vpack.c.bf16 %v1810_v53, %v1808_v50 }
 0x5b9   :  { %2075 = vst [vmem:[#allocation5 + $0xa8] sm:$0xff] %v2245_v54  ;;  %v1813_v55 = vpop.f32.mrb[88].mxu1 }
 0x5ba   :  { %v1814_v56 = vadd.f32 %v1813_v55, %v3473_v16  ;;  %v1815_v57 = vpop.f32.mrb[89].mxu1 }
 0x5bb   :  { %v1816_v58 = vadd.f32 %v1815_v57, %v3475_v4  ;;  %v1817_v59 = vpop.f32.mrb[90].mxu1 }
 0x5bc   :  { %v1818_v60 = vadd.f32 %v1817_v59, %v3473_v16  ;;  %v1819_v61 = vpop.f32.mrb[91].mxu1 }
 0x5bd   :  { %v2246_v62 = vpack.c.bf16 %v1816_v58, %v1814_v56  ;;  %v1820_v63 = vadd.f32 %v1819_v61, %v3475_v4 }
 0x5bf   :  { %2076 = vst [vmem:[#allocation5 + $0xb0] sm:$0xff] %v2246_v62  ;;  %v2247_v11 = vpack.c.bf16 %v1820_v63, %v1818_v60 }
 0x5c1   :  { %2077 = vst [vmem:[#allocation5 + $0xb8] sm:$0xff] %v2247_v11  ;;  %v1823_v0 = vpop.f32.mrb[92].mxu1 }
 0x5c2   :  { %v1824_v1 = vadd.f32 %v1823_v0, %v3473_v16  ;;  %v1825_v2 = vpop.f32.mrb[93].mxu1 }
 0x5c3   :  { %v1826_v3 = vadd.f32 %v1825_v2, %v3475_v4  ;;  %v1827_v5 = vpop.f32.mrb[94].mxu1 }
 0x5c4   :  { %v1828_v6 = vadd.f32 %v1827_v5, %v3473_v16  ;;  %v1829_v7 = vpop.f32.mrb[95].mxu1 }
 0x5c5   :  { %v2248_v8 = vpack.c.bf16 %v1826_v3, %v1824_v1  ;;  %v1830_v10 = vadd.f32 %v1829_v7, %v3475_v4 }
 0x5c7   :  { %2078 = vst [vmem:[#allocation5 + $0xc0] sm:$0xff] %v2248_v8  ;;  %v2249_v34 = vpack.c.bf16 %v1830_v10, %v1828_v6 }
 0x5c9   :  { %2079 = vst [vmem:[#allocation5 + $0xc8] sm:$0xff] %v2249_v34  ;;  %v1833_v9 = vpop.f32.mrb[96].mxu1 }
 0x5ca   :  { %v1834_v12 = vadd.f32 %v1833_v9, %v3473_v16  ;;  %v1835_v13 = vpop.f32.mrb[97].mxu1 }
 0x5cb   :  { %v1836_v14 = vadd.f32 %v1835_v13, %v3475_v4  ;;  %v1837_v27 = vpop.f32.mrb[98].mxu1 }
 0x5cc   :  { %v1838_v17 = vadd.f32 %v1837_v27, %v3473_v16  ;;  %v1839_v15 = vpop.f32.mrb[99].mxu1 }
 0x5cd   :  { %v2250_v18 = vpack.c.bf16 %v1836_v14, %v1834_v12  ;;  %v1840_v19 = vadd.f32 %v1839_v15, %v3475_v4 }
 0x5cf   :  { %2080 = vst [vmem:[#allocation5 + $0xd0] sm:$0xff] %v2250_v18  ;;  %v2251_v20 = vpack.c.bf16 %v1840_v19, %v1838_v17 }
 0x5d1   :  { %2081 = vst [vmem:[#allocation5 + $0xd8] sm:$0xff] %v2251_v20  ;;  %v1843_v21 = vpop.f32.mrb[100].mxu1 }
 0x5d2   :  { %v1844_v22 = vadd.f32 %v1843_v21, %v3473_v16  ;;  %v1845_v23 = vpop.f32.mrb[101].mxu1 }
 0x5d3   :  { %v1846_v24 = vadd.f32 %v1845_v23, %v3475_v4  ;;  %v1847_v25 = vpop.f32.mrb[102].mxu1 }
 0x5d4   :  { %v1848_v26 = vadd.f32 %v1847_v25, %v3473_v16  ;;  %v1849_v28 = vpop.f32.mrb[103].mxu1 }
 0x5d5   :  { %v2252_v29 = vpack.c.bf16 %v1846_v24, %v1844_v22  ;;  %v1850_v30 = vadd.f32 %v1849_v28, %v3475_v4 }
 0x5d7   :  { %2082 = vst [vmem:[#allocation5 + $0xe0] sm:$0xff] %v2252_v29  ;;  %v2253_v31 = vpack.c.bf16 %v1850_v30, %v1848_v26 }
 0x5d9   :  { %2083 = vst [vmem:[#allocation5 + $0xe8] sm:$0xff] %v2253_v31  ;;  %v1853_v32 = vpop.f32.mrb[104].mxu1 }
 0x5da   :  { %v1854_v33 = vadd.f32 %v1853_v32, %v3473_v16  ;;  %v1855_v35 = vpop.f32.mrb[105].mxu1 }
 0x5db   :  { %v1856_v36 = vadd.f32 %v1855_v35, %v3475_v4  ;;  %v1857_v37 = vpop.f32.mrb[106].mxu1 }
 0x5dc   :  { %v1858_v38 = vadd.f32 %v1857_v37, %v3473_v16  ;;  %v1859_v39 = vpop.f32.mrb[107].mxu1 }
 0x5dd   :  { %v2254_v40 = vpack.c.bf16 %v1856_v36, %v1854_v33  ;;  %v1860_v41 = vadd.f32 %v1859_v39, %v3475_v4 }
 0x5df   :  { %2084 = vst [vmem:[#allocation5 + $0xf0] sm:$0xff] %v2254_v40  ;;  %v2255_v42 = vpack.c.bf16 %v1860_v41, %v1858_v38 }
 0x5e1   :  { %2085 = vst [vmem:[#allocation5 + $0xf8] sm:$0xff] %v2255_v42 }
 0x5e2   :  { %3056 = shalt.err (!%p3053_p12)
}
 0x5e3   :  { %s3057_s17 = scalar_lea.hbm %s3559_s6, 4096 }
 0x5e4   :  { %p3058_p13 = scmp.ne.s32.totalorder %s3559_s6, %s3057_s17  ;;  %p3061_p0 = scmp.lt.u32.totalorder %s3057_s17, %s3559_s6 }
 0x5e6   :  { %p3063_p1 = pnand %p3061_p0, %p3058_p13 }
 0x5e8   :  { %3066 = shalt.err (!%p3063_p1)
}
 0x5e9   :  { %s3076_s21 = smov 128   ;;  %s3077_s22 = smov 8  }
 0x5ea   :  { %2097 = dma.vmem_to_hbm [thread:$0]  %s2092_s13, 4096, %s3559_s6, [#allocation4], %s3076_s21, %s3076_s21, %s3077_s22  }
 0x5eb   :  { %3069 = dma.done.wait [#allocation4], 4096  }
 0x5ec   :  { %3070 = vsyncadd [#allocation4], 4294963200 }
 0x5ed   :  { %2101 = vsyncpa [#allocation3], 1 }
 0x5ee   :  { %2102 = vsyncpa [#allocation4], 1 }

</bundles_post_ra>
